<compile_context>
chip_gen: v7x
topology: tpu7x:2x2x1
jax: 0.10.0
libtpu: 0.0.40
codegen_flags: <defaults>
</compile_context>

<pallas_src>
import jax
import jax.numpy as jnp
from jax.experimental import pallas as pl
from jax.experimental.pallas import tpu as pltpu

DIM_X = 20
DIM_W = 20
IN_FEATS = 1 + DIM_X                      # 21 (time column + x)
H1 = DIM_X + 10                           # 30
H2 = DIM_X * 2 + 10                       # 50
H3 = DIM_X * DIM_W + 10                   # 410
OUT = DIM_X * DIM_W                       # 400
EPS = 1e-6                                # module explicitly uses eps=1e-06

# packed small-parameter slab layout (rows of a (16, 512) f32 array)
MAXF = 512
ROW_G0X, ROW_BE0X = 0, 1                  # gamma0[1:21], beta0[1:21]  (20 cols)
ROW_G1, ROW_BE1 = 2, 3                    # (30)
ROW_G2, ROW_BE2 = 4, 5                    # (50)
ROW_G3, ROW_BE3 = 6, 7                    # (410)
ROW_G4, ROW_BE4 = 8, 9                    # (400)
ROW_B4 = 10                               # dense-4 bias (400)
ROW_W1T = 11                              # W1.T row 0 (the t-column weights, 30)
ROW_G0_0 = 12                             # gamma0[0] at col 0
ROW_BE0_0 = 13                            # beta0[0]  at col 0
SLAB_ROWS = 16


def fnnetq_kernel(t_ref, x_ref, slab_ref, w1x_ref, w2_ref, w3_ref, w4_ref, out_ref):
    step = pl.program_id(0)
    batch = x_ref.shape[1]
    inv_b = jnp.float32(1.0 / batch)

    def bn(h, row_g, row_b, f):
        """BatchNorm1d, training mode: batch mean / biased batch var, one pass.

        Mean is folded into the bias (h*scale + shift) to save one (B,F) VPU op.
        Single-pass var = E[x^2]-mean^2 (clamped at 0) can drift slightly from
        torch's two-pass variance when |mean| >> std.
        """
        g = slab_ref[row_g:row_g + 1, 0:f]
        b = slab_ref[row_b:row_b + 1, 0:f]
        s1 = jnp.sum(h, axis=0, keepdims=True)
        s2 = jnp.sum(h * h, axis=0, keepdims=True)
        mean = s1 * inv_b
        var = jnp.maximum(s2 * inv_b - mean * mean, 0.0)
        scale = jax.lax.rsqrt(var + EPS) * g
        shift = b - mean * scale
        return h * scale + shift

    # bn0 over the x part of [t, x]
    h = bn(x_ref[0], ROW_G0X, ROW_BE0X, DIM_X)

    # bn0 over the constant t column: batch mean == t, var == 0  ->  exactly beta0[0]
    t_val = t_ref[step, 0]
    g0_0 = slab_ref[ROW_G0_0:ROW_G0_0 + 1, 0:1]
    be0_0 = slab_ref[ROW_BE0_0:ROW_BE0_0 + 1, 0:1]
    t_col = (t_val - t_val) * (jax.lax.rsqrt(jnp.float32(EPS)) * g0_0) + be0_0  # (1,1)

    # dense1 (no bias), split over the [t | x] columns of W1 (f32 MXU, tiny)
    w1t = slab_ref[ROW_W1T:ROW_W1T + 1, 0:H1]                                   # (1,30)
    h = jnp.dot(h, w1x_ref[...], preferred_element_type=jnp.float32) + t_col * w1t
    h = jnp.maximum(bn(h, ROW_G1, ROW_BE1, H1), 0.0)

    h = jnp.dot(h, w2_ref[...], preferred_element_type=jnp.float32)
    h = jnp.maximum(bn(h, ROW_G2, ROW_BE2, H2), 0.0)

    # dominant matmuls on the bf16 MXU path (f32 accumulation)
    h = jnp.dot(h.astype(jnp.bfloat16), w3_ref[...], preferred_element_type=jnp.float32)
    h = jnp.maximum(bn(h, ROW_G3, ROW_BE3, H3), 0.0)

    # final dense (with bias) -> bn
    h = jnp.dot(h.astype(jnp.bfloat16), w4_ref[...], preferred_element_type=jnp.float32)
    h = h + slab_ref[ROW_B4:ROW_B4 + 1, 0:OUT]
    out_ref[0, :, :] = bn(h, ROW_G4, ROW_BE4, OUT)


def _vmem_limit_bytes():
    """Generation-aware scoped-VMEM limit.

    v5e/v6e: 128 MiB physical (scoped default only 16/32 MiB); v7x: 64 MiB physical.
    Use ~75% of physical, capped at 100 MiB, so the whole-batch single-pass BN keeps
    working for large batches without hand-tuning per chip.
    """
    phys = 64 * 1024 * 1024  # conservative fallback (v7x physical size)
    try:
        info = pltpu.get_tpu_info()
        phys = int(getattr(info, "vmem_capacity_bytes", phys))
    except Exception:
        pass
    return min((phys * 3) // 4, 100 * 1024 * 1024)


def init_params(key):
    """Deterministic init mimicking the torch module's shapes / init scheme."""
    ks = jax.random.split(key, 16)

    def linear_w(k, fan_in, fan_out):
        # torch.nn.Linear default: U(-1/sqrt(fan_in), 1/sqrt(fan_in)); stored (in, out) == weight.T
        bound = 1.0 / (fan_in ** 0.5)
        return jax.random.uniform(k, (fan_in, fan_out), jnp.float32, -bound, bound)

    w1 = linear_w(ks[0], IN_FEATS, H1)        # (21, 30)
    w2 = linear_w(ks[1], H1, H2)              # (30, 50)
    w3 = linear_w(ks[2], H2, H3)              # (50, 410)
    w4 = linear_w(ks[3], H3, OUT)             # (410, 400)
    bound4 = 1.0 / (H3 ** 0.5)
    b4 = jax.random.uniform(ks[4], (OUT,), jnp.float32, -bound4, bound4)

    # BatchNorm affine params: weight ~ N(0.3, 0.2), bias ~ N(0, 0.1)
    bn_feats = [IN_FEATS, H1, H2, H3, OUT]
    gammas, betas = [], []
    for i, f in enumerate(bn_feats):
        gammas.append(0.3 + 0.2 * jax.random.normal(ks[5 + 2 * i], (f,), jnp.float32))
        betas.append(0.1 * jax.random.normal(ks[6 + 2 * i], (f,), jnp.float32))

    slab = jnp.zeros((SLAB_ROWS, MAXF), jnp.float32)
    slab = slab.at[ROW_G0X, :DIM_X].set(gammas[0][1:])
    slab = slab.at[ROW_BE0X, :DIM_X].set(betas[0][1:])
    slab = slab.at[ROW_G1, :H1].set(gammas[1])
    slab = slab.at[ROW_BE1, :H1].set(betas[1])
    slab = slab.at[ROW_G2, :H2].set(gammas[2])
    slab = slab.at[ROW_BE2, :H2].set(betas[2])
    slab = slab.at[ROW_G3, :H3].set(gammas[3])
    slab = slab.at[ROW_BE3, :H3].set(betas[3])
    slab = slab.at[ROW_G4, :OUT].set(gammas[4])
    slab = slab.at[ROW_BE4, :OUT].set(betas[4])
    slab = slab.at[ROW_B4, :OUT].set(b4)
    slab = slab.at[ROW_W1T, :H1].set(w1[0, :])
    slab = slab.at[ROW_G0_0, 0].set(gammas[0][0])
    slab = slab.at[ROW_BE0_0, 0].set(betas[0][0])

    # w3/w4 stored bf16 (halves the dominant weight DMA; MXU is natively bf16)
    return {"slab": slab, "w1x": w1[1:, :], "w2": w2,
            "w3": w3.astype(jnp.bfloat16), "w4": w4.astype(jnp.bfloat16)}


def fnnetq_forward_steps(ts, xs, params):
    """Stacked evaluation of S independent forward calls.

    ts: (S,) float32 times, xs: (S, B, DIM_X) float32  ->  (S, B, DIM_X, DIM_W).
    Each grid step is a full batch, so BN statistics match per-call torch semantics.
    """
    S, B, _ = xs.shape
    t_arr = jnp.asarray(ts, jnp.float32).reshape(S, 1)

    smem = pl.BlockSpec(memory_space=pltpu.MemorySpace.SMEM)

    # TODO(synk): for a single very large batch (B beyond the per-generation VMEM
    # budget, ~4-5K rows on v7x / ~10K on v6e), add a batch-tiled two-pass BN
    # (global stat accumulation, then apply) instead of this whole-batch path.
    flat = pl.pallas_call(
        fnnetq_kernel,
        out_shape=jax.ShapeDtypeStruct((S, B, OUT), jnp.float32),
        grid_spec=pltpu.PrefetchScalarGridSpec(
            num_scalar_prefetch=0,
            grid=(S,),
            in_specs=[
                smem,                                                    # t (SMEM, whole)
                pl.BlockSpec((1, B, DIM_X), lambda s: (s, 0, 0)),        # x tile per step
                pl.BlockSpec((SLAB_ROWS, MAXF), lambda s: (0, 0)),       # resident
                pl.BlockSpec((DIM_X, H1), lambda s: (0, 0)),             # resident
                pl.BlockSpec((H1, H2), lambda s: (0, 0)),                # resident
                pl.BlockSpec((H2, H3), lambda s: (0, 0)),                # resident
                pl.BlockSpec((H3, OUT), lambda s: (0, 0)),               # resident
            ],
            out_specs=pl.BlockSpec((1, B, OUT), lambda s: (s, 0, 0)),
        ),
        compiler_params=pltpu.CompilerParams(
            dimension_semantics=("parallel",),       # v7x: split steps across both TCs
            vmem_limit_bytes=_vmem_limit_bytes(),
        ),
    )(t_arr, xs.astype(jnp.float32), params["slab"],
      params["w1x"], params["w2"], params["w3"], params["w4"])

    # row-major reshape (free) to match torch's x.view(B, dim_X, dim_W)
    return flat.reshape(S, B, DIM_X, DIM_W)


def fnnetq_forward(t, x, params):
    """Single-call convenience wrapper. t: scalar, x: (B, DIM_X) -> (B, DIM_X, DIM_W)."""
    # TODO(synk): if this must run once per solver time step, keep the weights
    # resident across calls with a cross-call prefetch (semaphore+VMEM outputs)
    # instead of re-DMAing them each invocation; prefer the stacked-steps API.
    out = fnnetq_forward_steps(jnp.reshape(jnp.float32(t), (1,)), x[None, :, :], params)
    return out[0]


if __name__ == "__main__":
    key = jax.random.PRNGKey(0)
    k_param, k_x = jax.random.split(key)

    params = init_params(k_param)

    S, B = 4, 8
    xs = jax.random.normal(k_x, (S, B, DIM_X), dtype=jnp.float32)
    ts = jnp.linspace(0.0, 1.0, S, dtype=jnp.float32)

    out = fnnetq_forward_steps(ts, xs, params)
    out = jax.block_until_ready(out)
    assert out.shape == (S, B, DIM_X, DIM_W) and out.dtype == jnp.float32
    assert bool(jnp.all(jnp.isfinite(out)))

    out1 = jax.block_until_ready(fnnetq_forward(0.5, xs[0], params))
    assert out1.shape == (B, DIM_X, DIM_W) and out1.dtype == jnp.float32
    assert bool(jnp.all(jnp.isfinite(out1)))

    print("KERNEL_OK")
</pallas_src>

<mosaic_0001>
module attributes {stable_mosaic.version = 11 : i64} {
  func.func @fnnetq_kernel(%arg0: i32, %arg1: memref<4x1xf32, #tpu.memory_space<smem>>, %arg2: memref<1x8x20xf32, #tpu.memory_space<vmem>>, %arg3: memref<16x512xf32, #tpu.memory_space<vmem>>, %arg4: memref<20x30xf32, #tpu.memory_space<vmem>>, %arg5: memref<30x50xf32, #tpu.memory_space<vmem>>, %arg6: memref<50x410xbf16, #tpu.memory_space<vmem>>, %arg7: memref<410x400xbf16, #tpu.memory_space<vmem>>, %arg8: memref<1x8x400xf32, #tpu.memory_space<vmem>>) attributes {dimension_semantics = [#tpu.dimension_semantics<parallel>], iteration_bounds = array<i64: 4>, scalar_prefetch = 0 : i64, scratch_operands = 0 : i64, tpu.core_type = #tpu.core_type<tc>, window_params = [{transform_indices = @transform_0, window_bounds = array<i64: 4, 1>}, {transform_indices = @transform_1, window_bounds = array<i64: 1, 8, 20>}, {pipeline_mode = #tpu.pipeline_mode<synchronous>, transform_indices = @transform_2, window_bounds = array<i64: 16, 512>}, {pipeline_mode = #tpu.pipeline_mode<synchronous>, transform_indices = @transform_3, window_bounds = array<i64: 20, 30>}, {pipeline_mode = #tpu.pipeline_mode<synchronous>, transform_indices = @transform_4, window_bounds = array<i64: 30, 50>}, {pipeline_mode = #tpu.pipeline_mode<synchronous>, transform_indices = @transform_5, window_bounds = array<i64: 50, 410>}, {pipeline_mode = #tpu.pipeline_mode<synchronous>, transform_indices = @transform_6, window_bounds = array<i64: 410, 400>}, {transform_indices = @transform_7, window_bounds = array<i64: 1, 8, 400>}]} {
    %c0 = arith.constant 0 : index
    %c0_0 = arith.constant 0 : index
    %c0_1 = arith.constant 0 : index
    %0 = vector.load %arg2[%c0, %c0_0, %c0_1] : memref<1x8x20xf32, #tpu.memory_space<vmem>>, vector<1x8x20xf32>
    %1 = vector.shape_cast %0 : vector<1x8x20xf32> to vector<8x20xf32>
    %c0_2 = arith.constant 0 : index
    %c0_3 = arith.constant 0 : index
    %2 = vector.load %arg3[%c0_2, %c0_3] : memref<16x512xf32, #tpu.memory_space<vmem>>, vector<1x20xf32>
    %c1 = arith.constant 1 : index
    %c0_4 = arith.constant 0 : index
    %3 = vector.load %arg3[%c1, %c0_4] : memref<16x512xf32, #tpu.memory_space<vmem>>, vector<1x20xf32>
    %cst = arith.constant dense<0.000000e+00> : vector<20xf32>
    %4 = vector.multi_reduction <add>, %1, %cst [0] : vector<8x20xf32> to vector<20xf32>
    %5 = vector.shape_cast %4 : vector<20xf32> to vector<1x20xf32>
    %6 = arith.mulf %1, %1 : vector<8x20xf32>
    %cst_5 = arith.constant dense<0.000000e+00> : vector<20xf32>
    %7 = vector.multi_reduction <add>, %6, %cst_5 [0] : vector<8x20xf32> to vector<20xf32>
    %8 = vector.shape_cast %7 : vector<20xf32> to vector<1x20xf32>
    %cst_6 = arith.constant 1.250000e-01 : f32
    %9 = vector.broadcast %cst_6 : f32 to vector<1x20xf32>
    %10 = arith.mulf %5, %9 : vector<1x20xf32>
    %cst_7 = arith.constant 1.250000e-01 : f32
    %11 = vector.broadcast %cst_7 : f32 to vector<1x20xf32>
    %12 = arith.mulf %8, %11 : vector<1x20xf32>
    %13 = arith.mulf %10, %10 : vector<1x20xf32>
    %14 = arith.subf %12, %13 : vector<1x20xf32>
    %cst_8 = arith.constant 0.000000e+00 : f32
    %15 = vector.broadcast %cst_8 : f32 to vector<1x20xf32>
    %16 = arith.maximumf %14, %15 : vector<1x20xf32>
    %cst_9 = arith.constant 9.99999997E-7 : f32
    %17 = vector.broadcast %cst_9 : f32 to vector<1x20xf32>
    %18 = arith.addf %16, %17 : vector<1x20xf32>
    %19 = math.rsqrt %18 : vector<1x20xf32>
    %20 = arith.mulf %19, %2 : vector<1x20xf32>
    %21 = arith.mulf %10, %20 : vector<1x20xf32>
    %22 = arith.subf %3, %21 : vector<1x20xf32>
    %23 = vector.broadcast %20 : vector<1x20xf32> to vector<8x20xf32>
    %24 = arith.mulf %1, %23 : vector<8x20xf32>
    %25 = vector.broadcast %22 : vector<1x20xf32> to vector<8x20xf32>
    %26 = arith.addf %24, %25 : vector<8x20xf32>
    %27 = arith.index_cast %arg0 : i32 to index
    %c0_10 = arith.constant 0 : index
    %28 = memref.load %arg1[%27, %c0_10] : memref<4x1xf32, #tpu.memory_space<smem>>
    %c12 = arith.constant 12 : index
    %c0_11 = arith.constant 0 : index
    %29 = vector.load %arg3[%c12, %c0_11] : memref<16x512xf32, #tpu.memory_space<vmem>>, vector<1x1xf32>
    %c13 = arith.constant 13 : index
    %c0_12 = arith.constant 0 : index
    %30 = vector.load %arg3[%c13, %c0_12] : memref<16x512xf32, #tpu.memory_space<vmem>>, vector<1x1xf32>
    %31 = arith.subf %28, %28 : f32
    %cst_13 = arith.constant 9.99999997E-7 : f32
    %32 = math.rsqrt %cst_13 : f32
    %33 = vector.broadcast %32 : f32 to vector<1x1xf32>
    %34 = arith.mulf %33, %29 : vector<1x1xf32>
    %35 = vector.broadcast %31 : f32 to vector<1x1xf32>
    %36 = arith.mulf %35, %34 : vector<1x1xf32>
    %37 = arith.addf %36, %30 : vector<1x1xf32>
    %c11 = arith.constant 11 : index
    %c0_14 = arith.constant 0 : index
    %38 = vector.load %arg3[%c11, %c0_14] : memref<16x512xf32, #tpu.memory_space<vmem>>, vector<1x30xf32>
    %c0_15 = arith.constant 0 : index
    %c0_16 = arith.constant 0 : index
    %39 = vector.load %arg4[%c0_15, %c0_16] : memref<20x30xf32, #tpu.memory_space<vmem>>, vector<20x30xf32>
    %cst_17 = arith.constant dense<0.000000e+00> : vector<8x30xf32>
    %40 = tpu.matmul %26, %39, %cst_17 {dimension_numbers = #tpu.dot_dimension_numbers<[1], [0], [0], [1], [0, 0, 1, 1], [], []>} : vector<8x20xf32>, vector<20x30xf32>, vector<8x30xf32> -> vector<8x30xf32>
    %41 = vector.broadcast %37 : vector<1x1xf32> to vector<1x30xf32>
    %42 = arith.mulf %41, %38 : vector<1x30xf32>
    %43 = vector.broadcast %42 : vector<1x30xf32> to vector<8x30xf32>
    %44 = arith.addf %40, %43 : vector<8x30xf32>
    %c2 = arith.constant 2 : index
    %c0_18 = arith.constant 0 : index
    %45 = vector.load %arg3[%c2, %c0_18] : memref<16x512xf32, #tpu.memory_space<vmem>>, vector<1x30xf32>
    %c3 = arith.constant 3 : index
    %c0_19 = arith.constant 0 : index
    %46 = vector.load %arg3[%c3, %c0_19] : memref<16x512xf32, #tpu.memory_space<vmem>>, vector<1x30xf32>
    %cst_20 = arith.constant dense<0.000000e+00> : vector<30xf32>
    %47 = vector.multi_reduction <add>, %44, %cst_20 [0] : vector<8x30xf32> to vector<30xf32>
    %48 = vector.shape_cast %47 : vector<30xf32> to vector<1x30xf32>
    %49 = arith.mulf %44, %44 : vector<8x30xf32>
    %cst_21 = arith.constant dense<0.000000e+00> : vector<30xf32>
    %50 = vector.multi_reduction <add>, %49, %cst_21 [0] : vector<8x30xf32> to vector<30xf32>
    %51 = vector.shape_cast %50 : vector<30xf32> to vector<1x30xf32>
    %cst_22 = arith.constant 1.250000e-01 : f32
    %52 = vector.broadcast %cst_22 : f32 to vector<1x30xf32>
    %53 = arith.mulf %48, %52 : vector<1x30xf32>
    %cst_23 = arith.constant 1.250000e-01 : f32
    %54 = vector.broadcast %cst_23 : f32 to vector<1x30xf32>
    %55 = arith.mulf %51, %54 : vector<1x30xf32>
    %56 = arith.mulf %53, %53 : vector<1x30xf32>
    %57 = arith.subf %55, %56 : vector<1x30xf32>
    %cst_24 = arith.constant 0.000000e+00 : f32
    %58 = vector.broadcast %cst_24 : f32 to vector<1x30xf32>
    %59 = arith.maximumf %57, %58 : vector<1x30xf32>
    %cst_25 = arith.constant 9.99999997E-7 : f32
    %60 = vector.broadcast %cst_25 : f32 to vector<1x30xf32>
    %61 = arith.addf %59, %60 : vector<1x30xf32>
    %62 = math.rsqrt %61 : vector<1x30xf32>
    %63 = arith.mulf %62, %45 : vector<1x30xf32>
    %64 = arith.mulf %53, %63 : vector<1x30xf32>
    %65 = arith.subf %46, %64 : vector<1x30xf32>
    %66 = vector.broadcast %63 : vector<1x30xf32> to vector<8x30xf32>
    %67 = arith.mulf %44, %66 : vector<8x30xf32>
    %68 = vector.broadcast %65 : vector<1x30xf32> to vector<8x30xf32>
    %69 = arith.addf %67, %68 : vector<8x30xf32>
    %cst_26 = arith.constant 0.000000e+00 : f32
    %70 = vector.broadcast %cst_26 : f32 to vector<8x30xf32>
    %71 = arith.maximumf %69, %70 : vector<8x30xf32>
    %c0_27 = arith.constant 0 : index
    %c0_28 = arith.constant 0 : index
    %72 = vector.load %arg5[%c0_27, %c0_28] : memref<30x50xf32, #tpu.memory_space<vmem>>, vector<30x50xf32>
    %cst_29 = arith.constant dense<0.000000e+00> : vector<8x50xf32>
    %73 = tpu.matmul %71, %72, %cst_29 {dimension_numbers = #tpu.dot_dimension_numbers<[1], [0], [0], [1], [0, 0, 1, 1], [], []>} : vector<8x30xf32>, vector<30x50xf32>, vector<8x50xf32> -> vector<8x50xf32>
    %c4 = arith.constant 4 : index
    %c0_30 = arith.constant 0 : index
    %74 = vector.load %arg3[%c4, %c0_30] : memref<16x512xf32, #tpu.memory_space<vmem>>, vector<1x50xf32>
    %c5 = arith.constant 5 : index
    %c0_31 = arith.constant 0 : index
    %75 = vector.load %arg3[%c5, %c0_31] : memref<16x512xf32, #tpu.memory_space<vmem>>, vector<1x50xf32>
    %cst_32 = arith.constant dense<0.000000e+00> : vector<50xf32>
    %76 = vector.multi_reduction <add>, %73, %cst_32 [0] : vector<8x50xf32> to vector<50xf32>
    %77 = vector.shape_cast %76 : vector<50xf32> to vector<1x50xf32>
    %78 = arith.mulf %73, %73 : vector<8x50xf32>
    %cst_33 = arith.constant dense<0.000000e+00> : vector<50xf32>
    %79 = vector.multi_reduction <add>, %78, %cst_33 [0] : vector<8x50xf32> to vector<50xf32>
    %80 = vector.shape_cast %79 : vector<50xf32> to vector<1x50xf32>
    %cst_34 = arith.constant 1.250000e-01 : f32
    %81 = vector.broadcast %cst_34 : f32 to vector<1x50xf32>
    %82 = arith.mulf %77, %81 : vector<1x50xf32>
    %cst_35 = arith.constant 1.250000e-01 : f32
    %83 = vector.broadcast %cst_35 : f32 to vector<1x50xf32>
    %84 = arith.mulf %80, %83 : vector<1x50xf32>
    %85 = arith.mulf %82, %82 : vector<1x50xf32>
    %86 = arith.subf %84, %85 : vector<1x50xf32>
    %cst_36 = arith.constant 0.000000e+00 : f32
    %87 = vector.broadcast %cst_36 : f32 to vector<1x50xf32>
    %88 = arith.maximumf %86, %87 : vector<1x50xf32>
    %cst_37 = arith.constant 9.99999997E-7 : f32
    %89 = vector.broadcast %cst_37 : f32 to vector<1x50xf32>
    %90 = arith.addf %88, %89 : vector<1x50xf32>
    %91 = math.rsqrt %90 : vector<1x50xf32>
    %92 = arith.mulf %91, %74 : vector<1x50xf32>
    %93 = arith.mulf %82, %92 : vector<1x50xf32>
    %94 = arith.subf %75, %93 : vector<1x50xf32>
    %95 = vector.broadcast %92 : vector<1x50xf32> to vector<8x50xf32>
    %96 = arith.mulf %73, %95 : vector<8x50xf32>
    %97 = vector.broadcast %94 : vector<1x50xf32> to vector<8x50xf32>
    %98 = arith.addf %96, %97 : vector<8x50xf32>
    %cst_38 = arith.constant 0.000000e+00 : f32
    %99 = vector.broadcast %cst_38 : f32 to vector<8x50xf32>
    %100 = arith.maximumf %98, %99 : vector<8x50xf32>
    %101 = arith.truncf %100 : vector<8x50xf32> to vector<8x50xbf16>
    %c0_39 = arith.constant 0 : index
    %c0_40 = arith.constant 0 : index
    %102 = vector.load %arg6[%c0_39, %c0_40] : memref<50x410xbf16, #tpu.memory_space<vmem>>, vector<50x410xbf16>
    %cst_41 = arith.constant dense<0.000000e+00> : vector<8x410xf32>
    %103 = tpu.matmul %101, %102, %cst_41 {dimension_numbers = #tpu.dot_dimension_numbers<[1], [0], [0], [1], [0, 0, 1, 1], [], []>} : vector<8x50xbf16>, vector<50x410xbf16>, vector<8x410xf32> -> vector<8x410xf32>
    %c6 = arith.constant 6 : index
    %c0_42 = arith.constant 0 : index
    %104 = vector.load %arg3[%c6, %c0_42] : memref<16x512xf32, #tpu.memory_space<vmem>>, vector<1x410xf32>
    %c7 = arith.constant 7 : index
    %c0_43 = arith.constant 0 : index
    %105 = vector.load %arg3[%c7, %c0_43] : memref<16x512xf32, #tpu.memory_space<vmem>>, vector<1x410xf32>
    %cst_44 = arith.constant dense<0.000000e+00> : vector<410xf32>
    %106 = vector.multi_reduction <add>, %103, %cst_44 [0] : vector<8x410xf32> to vector<410xf32>
    %107 = vector.shape_cast %106 : vector<410xf32> to vector<1x410xf32>
    %108 = arith.mulf %103, %103 : vector<8x410xf32>
    %cst_45 = arith.constant dense<0.000000e+00> : vector<410xf32>
    %109 = vector.multi_reduction <add>, %108, %cst_45 [0] : vector<8x410xf32> to vector<410xf32>
    %110 = vector.shape_cast %109 : vector<410xf32> to vector<1x410xf32>
    %cst_46 = arith.constant 1.250000e-01 : f32
    %111 = vector.broadcast %cst_46 : f32 to vector<1x410xf32>
    %112 = arith.mulf %107, %111 : vector<1x410xf32>
    %cst_47 = arith.constant 1.250000e-01 : f32
    %113 = vector.broadcast %cst_47 : f32 to vector<1x410xf32>
    %114 = arith.mulf %110, %113 : vector<1x410xf32>
    %115 = arith.mulf %112, %112 : vector<1x410xf32>
    %116 = arith.subf %114, %115 : vector<1x410xf32>
    %cst_48 = arith.constant 0.000000e+00 : f32
    %117 = vector.broadcast %cst_48 : f32 to vector<1x410xf32>
    %118 = arith.maximumf %116, %117 : vector<1x410xf32>
    %cst_49 = arith.constant 9.99999997E-7 : f32
    %119 = vector.broadcast %cst_49 : f32 to vector<1x410xf32>
    %120 = arith.addf %118, %119 : vector<1x410xf32>
    %121 = math.rsqrt %120 : vector<1x410xf32>
    %122 = arith.mulf %121, %104 : vector<1x410xf32>
    %123 = arith.mulf %112, %122 : vector<1x410xf32>
    %124 = arith.subf %105, %123 : vector<1x410xf32>
    %125 = vector.broadcast %122 : vector<1x410xf32> to vector<8x410xf32>
    %126 = arith.mulf %103, %125 : vector<8x410xf32>
    %127 = vector.broadcast %124 : vector<1x410xf32> to vector<8x410xf32>
    %128 = arith.addf %126, %127 : vector<8x410xf32>
    %cst_50 = arith.constant 0.000000e+00 : f32
    %129 = vector.broadcast %cst_50 : f32 to vector<8x410xf32>
    %130 = arith.maximumf %128, %129 : vector<8x410xf32>
    %131 = arith.truncf %130 : vector<8x410xf32> to vector<8x410xbf16>
    %c0_51 = arith.constant 0 : index
    %c0_52 = arith.constant 0 : index
    %132 = vector.load %arg7[%c0_51, %c0_52] : memref<410x400xbf16, #tpu.memory_space<vmem>>, vector<410x400xbf16>
    %cst_53 = arith.constant dense<0.000000e+00> : vector<8x400xf32>
    %133 = tpu.matmul %131, %132, %cst_53 {dimension_numbers = #tpu.dot_dimension_numbers<[1], [0], [0], [1], [0, 0, 1, 1], [], []>} : vector<8x410xbf16>, vector<410x400xbf16>, vector<8x400xf32> -> vector<8x400xf32>
    %c10 = arith.constant 10 : index
    %c0_54 = arith.constant 0 : index
    %134 = vector.load %arg3[%c10, %c0_54] : memref<16x512xf32, #tpu.memory_space<vmem>>, vector<1x400xf32>
    %135 = vector.broadcast %134 : vector<1x400xf32> to vector<8x400xf32>
    %136 = arith.addf %133, %135 : vector<8x400xf32>
    %c8 = arith.constant 8 : index
    %c0_55 = arith.constant 0 : index
    %137 = vector.load %arg3[%c8, %c0_55] : memref<16x512xf32, #tpu.memory_space<vmem>>, vector<1x400xf32>
    %c9 = arith.constant 9 : index
    %c0_56 = arith.constant 0 : index
    %138 = vector.load %arg3[%c9, %c0_56] : memref<16x512xf32, #tpu.memory_space<vmem>>, vector<1x400xf32>
    %cst_57 = arith.constant dense<0.000000e+00> : vector<400xf32>
    %139 = vector.multi_reduction <add>, %136, %cst_57 [0] : vector<8x400xf32> to vector<400xf32>
    %140 = vector.shape_cast %139 : vector<400xf32> to vector<1x400xf32>
    %141 = arith.mulf %136, %136 : vector<8x400xf32>
    %cst_58 = arith.constant dense<0.000000e+00> : vector<400xf32>
    %142 = vector.multi_reduction <add>, %141, %cst_58 [0] : vector<8x400xf32> to vector<400xf32>
    %143 = vector.shape_cast %142 : vector<400xf32> to vector<1x400xf32>
    %cst_59 = arith.constant 1.250000e-01 : f32
    %144 = vector.broadcast %cst_59 : f32 to vector<1x400xf32>
    %145 = arith.mulf %140, %144 : vector<1x400xf32>
    %cst_60 = arith.constant 1.250000e-01 : f32
    %146 = vector.broadcast %cst_60 : f32 to vector<1x400xf32>
    %147 = arith.mulf %143, %146 : vector<1x400xf32>
    %148 = arith.mulf %145, %145 : vector<1x400xf32>
    %149 = arith.subf %147, %148 : vector<1x400xf32>
    %cst_61 = arith.constant 0.000000e+00 : f32
    %150 = vector.broadcast %cst_61 : f32 to vector<1x400xf32>
    %151 = arith.maximumf %149, %150 : vector<1x400xf32>
    %cst_62 = arith.constant 9.99999997E-7 : f32
    %152 = vector.broadcast %cst_62 : f32 to vector<1x400xf32>
    %153 = arith.addf %151, %152 : vector<1x400xf32>
    %154 = math.rsqrt %153 : vector<1x400xf32>
    %155 = arith.mulf %154, %137 : vector<1x400xf32>
    %156 = arith.mulf %145, %155 : vector<1x400xf32>
    %157 = arith.subf %138, %156 : vector<1x400xf32>
    %158 = vector.broadcast %155 : vector<1x400xf32> to vector<8x400xf32>
    %159 = arith.mulf %136, %158 : vector<8x400xf32>
    %160 = vector.broadcast %157 : vector<1x400xf32> to vector<8x400xf32>
    %161 = arith.addf %159, %160 : vector<8x400xf32>
    %c0_63 = arith.constant 0 : index
    %c0_64 = arith.constant 0 : index
    %c0_65 = arith.constant 0 : index
    %162 = vector.load %arg8[%c0_63, %c0_64, %c0_65] : memref<1x8x400xf32, #tpu.memory_space<vmem>>, vector<1x8x400xf32>
    %163 = vector.shape_cast %162 : vector<1x8x400xf32> to vector<8x400xf32>
    %164 = vector.shape_cast %161 : vector<8x400xf32> to vector<1x8x400xf32>
    tpu.vector_store %arg8[%c0_63, %c0_64, %c0_65], %164 {strides = array<i32>} : memref<1x8x400xf32, #tpu.memory_space<vmem>>, vector<1x8x400xf32>,
    return
  }
  func.func @transform_0(%arg0: i32) -> (i32, i32) {
    %c0_i32 = arith.constant 0 : i32
    %c0_i32_0 = arith.constant 0 : i32
    %c0_i32_1 = arith.constant 0 : i32
    return %c0_i32, %c0_i32_0 : i32, i32
  }
  func.func @transform_1(%arg0: i32) -> (i32, i32, i32) {
    %c0_i32 = arith.constant 0 : i32
    %c0_i32_0 = arith.constant 0 : i32
    %c0_i32_1 = arith.constant 0 : i32
    return %arg0, %c0_i32, %c0_i32_0 : i32, i32, i32
  }
  func.func @transform_2(%arg0: i32) -> (i32, i32) {
    %c0_i32 = arith.constant 0 : i32
    %c0_i32_0 = arith.constant 0 : i32
    %c0_i32_1 = arith.constant 0 : i32
    return %c0_i32, %c0_i32_0 : i32, i32
  }
  func.func @transform_3(%arg0: i32) -> (i32, i32) {
    %c0_i32 = arith.constant 0 : i32
    %c0_i32_0 = arith.constant 0 : i32
    %c0_i32_1 = arith.constant 0 : i32
    return %c0_i32, %c0_i32_0 : i32, i32
  }
  func.func @transform_4(%arg0: i32) -> (i32, i32) {
    %c0_i32 = arith.constant 0 : i32
    %c0_i32_0 = arith.constant 0 : i32
    %c0_i32_1 = arith.constant 0 : i32
    return %c0_i32, %c0_i32_0 : i32, i32
  }
  func.func @transform_5(%arg0: i32) -> (i32, i32) {
    %c0_i32 = arith.constant 0 : i32
    %c0_i32_0 = arith.constant 0 : i32
    %c0_i32_1 = arith.constant 0 : i32
    return %c0_i32, %c0_i32_0 : i32, i32
  }
  func.func @transform_6(%arg0: i32) -> (i32, i32) {
    %c0_i32 = arith.constant 0 : i32
    %c0_i32_0 = arith.constant 0 : i32
    %c0_i32_1 = arith.constant 0 : i32
    return %c0_i32, %c0_i32_0 : i32, i32
  }
  func.func @transform_7(%arg0: i32) -> (i32, i32, i32) {
    %c0_i32 = arith.constant 0 : i32
    %c0_i32_0 = arith.constant 0 : i32
    %c0_i32_1 = arith.constant 0 : i32
    return %arg0, %c0_i32, %c0_i32_0 : i32, i32, i32
  }
}

</mosaic_0001>

<bundles_post_ra>
// kernel: tpu_custom_call.1
= control target key start
LH: loop header
LB: loop body
LE: loop exit
PB: predicated region body
PF: predicated region fallthrough
CT: control target
= control target key end

     0   :  { %12 = vsyncpa [#allocation4], 0  ;;  %s3300_s0 = inlined_call_operand.vmem [shape: f32[4,1], index: 0, kind: input, shape index: {}]   ;;  %s3301_s1 = inlined_call_operand.vmem [shape: f32[4,8,20], index: 1, kind: input, shape index: {}]   ;;  %s3302_s2 = inlined_call_operand.vmem [shape: f32[16,512], index: 2, kind: input, shape index: {}]   ;;  %s3303_s3 = inlined_call_operand.vmem [shape: f32[20,30], index: 3, kind: input, shape index: {}]   ;;  %s3304_s4 = inlined_call_operand.vmem [shape: f32[30,50], index: 4, kind: input, shape index: {}]   ;;  %s3305_s5 = inlined_call_operand.vmem [shape: bf16[50,410], index: 5, kind: input, shape index: {}]   ;;  %s3306_s6 = inlined_call_operand.vmem [shape: bf16[410,400], index: 6, kind: input, shape index: {}]   ;;  %s3307_s7 = inlined_call_operand.hbm [shape: f32[4,8,400], index: 7, kind: output, shape index: {}]  }
   0x1   :  { %13 = vsyncpa [#allocation3], 0 }
   0x2   :  { %15 = vsyncpa [#allocation3 + $0x1], 0  ;;  %s2636_s24 = smov 0   ;;  %s2638_s25 = smov 0  }
   0x3   :  { %s2640_s26 = smov 0   ;;  %s2642_s27 = smov 0  }
   0x4 LB: > { %s2657_s28 = sadd.s32 4294967295, %s2586_s27   ;;  %s2045_s29 = sadd.s32 4294967294, %s2586_s27   ;;  %s2586_s27 = sphi %s2642_s27, %s3314_s27   ;;  %s2582_s26 = sphi %s2640_s26, %s3313_s26   ;;  %s2578_s25 = sphi %s2638_s25, %s3312_s25   ;;  %s2574_s24 = sphi %s2636_s24, %s3311_s24  }
   0x5   : > { %s2661_s30 = sadd.s32 1, %s2586_s27   ;;  %s180_s8 = sadd.s32 1, %s2582_s26 }
   0x6   : > { %s177_s9 = ssub.s32 %s2586_s27, %s2661_s30  ;;  %p190_p0 = scmp.ne.s32.totalorder %s2582_s26, %s2578_s25 }
   0x7   : > { %p178_p1 = scmp.eq.s32.totalorder %s177_s9, 0  ;;  %p191_p2 = scmp.eq.s32.totalorder %s2657_s28, 3 }
   0x8   : > { %p196_p3 = scmp.ne.s32.totalorder %s2578_s25, %s2574_s24  ;;  %p197_p4 = scmp.eq.s32.totalorder %s2045_s29, 3 }
   0x9   : > { %s2672_s10 = scalar_select %p178_p1, %s2582_s26, %s180_s8  }
   0xa   : > { %p2674_p5 = por %p191_p2, %p190_p0  ;;  %p2678_p6 = por %p197_p4, %p196_p3 }
   0xb   : > { %p2046_p7 = scmp.ge.s32.totalorder %s2586_s27, 1  ;;  %p204_p8 = scmp.lt.s32.totalorder %s2586_s27, 5 }
   0xc   : > { %p2262_p9 = scmp.eq.s32.totalorder %s2657_s28, 0  ;;  %s217_s16 = sshll.u32 %s3300_s0, 4  ;;  %s218_s16 = int_to_ptr.vmem [resolvable:$true] %s217_s16 }
   0xd   : > { %p2685_p10 = pnand %p2046_p7, %p204_p8  ;;  %s2505_s17 = scalar_lea.vmem %s218_s16, 64 }
   0xe   : > { %p2506_p13 = scmp.ne.s32.totalorder %s218_s16, %s2505_s17  ;;  %p2513_p3 = scmp.lt.s32.totalorder %s218_s16, %s218_s16 }
   0xf   : > { %p2254_p11 = pneg %p2685_p10  ;;  %p2514_p4 = scmp.lt.s32.totalorder %s2505_s17, %s2505_s17 }
  0x11   : > { %p2255_p12 = pnand %p2262_p9, %p2254_p11  ;;  %p2515_p7 = por %p2514_p4, %p2513_p3 }
  0x13   : > { %p2507_p0 = pneg %p2255_p12 }
  0x15   : > { %p2508_p1 = pnand %p2507_p0, %p2506_p13 }
  0x17   : > { %p2509_p2 = pneg %p2508_p1 }
  0x19   : > { %p2516_p8 = pnand %p2515_p7, %p2509_p2 }
  0x1b   : > { %2519 = shalt.err (!%p2516_p8)
}
  0x1c   : > { %s2588_s18 = smov [#allocation2]   ;;  %252 = sbr.rel (%p2685_p10) target bundleno = 1197 (0x4ad), region = 48 }
  0x1d   : > { %2257 = dma.vmem_to_smem (!%p2255_p12), %s218_s16, 64, %s2588_s18, [#allocation4]  }
  0x23   : > { %2565 = dma.done.wait (%p2262_p9), [#allocation4], 64  }
  0x24   : > { %2567 = vsyncadd (%p2262_p9), [#allocation4], 4294967232 }
  0x25   : > { %258 = sfence }
  0x26   : > { %v330_v0 = vld [vmem:[%s3303_s3] sm:$0xff]  ;;  %v331_v1 = vld [vmem:[%s3303_s3 + $0x8] sm:$0xff]  ;;  %v2589_v2 = vmov 0.0|0.0   ;;  %p284_p10 = scmp.lt.s32.totalorder %s2657_s28, 3  ;;  %vm2590_vm0 = vmmov 0   ;;  %v2591_v4 = vmov 0.0  }
  0x27   : > { %2226 = vmatprep.subr.bf16.mxu0 %v2589_v2  ;;  %v2227_v3 = vpack.c.bf16 %v331_v1, %v330_v0  ;;  %2229 = vmatprep.subr.bf16.mxu1 %v2589_v2  ;;  %s2053_s23 = sshll.u32 %s2657_s28, 7  ;;  %v332_v5 = vld [vmem:[%s3303_s3 + $0x10] sm:$0xf]  ;;  %v2592_v6 = vmov 0   ;;  %vm342_vm1 = vcmask 1043456   ;;  %vm292_vm2 = vcmask 162816  }
  0x28   : > { %2212 = vmatprep.mubr.msk.f32.mxu0 %vm2590_vm0, %v2591_v4  ;;  %2223 = vmatprep.mubr.msk.f32.mxu1 %vm2590_vm0, %v2591_v4  ;;  %s285_s9 = scalar_select %p284_p10, %s2657_s28, 3  ;;  %v322_v7 = vld [vmem:[%s3302_s2 + $0x24] ss:$0 sm:$0xff]  ;;  %v323_v14 = vld [vmem:[%s3302_s2 + $0x25] ss:$0 sm:$0xff]  ;;  %v448_v44 = vld [vmem:[%s3304_s4 + $0x8] sm:$0xff] }
  0x29   : > { %2228 = vmatpush3.bf16.msra.mxu0 %v2227_v3  ;;  %2304 = vset.pattern.permute.xlu0 %v2592_v6  ;;  %s321_s13 = sld [smem:[#allocation2 + %s2053_s23]]  ;;  %v325_v12 = vmul.f32 999.99994, %v322_v7  ;;  %v290_v35 = vld [vmem:[%s3302_s2] ss:$0 sm:$0xff]  ;;  %v449_v45 = vld [vmem:[%s3304_s4 + $0x10] sm:$0xff] }
  0x2a   : > { %2210 = vmatprep.subr.mxu0 %v2591_v4  ;;  %s2052_s16 = sshll.u32 %s285_s9, 3  ;;  %v291_v38 = vld [vmem:[%s3302_s2 + $0x1] ss:$0 sm:$0xff]  ;;  %v450_v47 = vld [vmem:[%s3304_s4 + $0x18] sm:$0x3f]  ;;  %vm454_vm3 = vcmask 1045504  }
  0x2b   : > { %s287_s19 = scalar_lea.vmem %s3301_s1, %s2052_s16  ;;  %v447_v43 = vld [vmem:[%s3304_s4] sm:$0xff]  ;;  %v2233_v48 = vpack.c.bf16 %v450_v47, %v449_v45  ;;  %vm2593_vm4 = vmmov 1   ;;  %vm418_vm6 = vcmask 244736   ;;  %vm647_vm7 = vcmask 1040384   ;;  %s281_s23 = sand.u32 1, %s2578_s25  }
  0x2c   : > { %v289_v8 = vld [vmem:[%s287_s19] sm:$0xff]  ;;  %v2230_v46 = vpack.c.bf16 %v448_v44, %v447_v43  ;;  %vm2234_vm5 = vmpackc.low %vm454_vm3, %vm2593_vm4  ;;  %vm530_vm8 = vcmask 408576   ;;  %vm764_vm9 = vcmask 211968   ;;  %vm1587_vm10 = vcmask 1044480   ;;  %s2051_s29 = sshll.u32 %s281_s23, 5  ;;  %s1960_s18 = scalar_lea.sflag [#allocation3], %s281_s23 }
  0x2d   : > { %2211 = vmatpush3.msk.msra.mxu0 %vm342_vm1, %v332_v5  ;;  %v293_v9 = vsel %vm292_vm2, %v289_v8, 0.0  ;;  %v300_v10 = vmul.f32 %v289_v8, %v289_v8  ;;  %v329_v49 = vld [vmem:[%s3302_s2 + $0x23] ss:$0 sm:$0xff]  ;;  %vm1786_vm11 = vcmask 130048   ;;  %s283_s14 = scalar_lea.vmem [#allocation5], %s2051_s29  ;;  %s2595_s20 = smov [#allocation5]  }
  0x2e   : > { %v294_v11 = vrot.slane %v293_v9, 4  ;;  %2231 = vmatpush3.bf16.msra.mxu1 %v2230_v46  ;;  %s1974_s15 = sshll.u32 %s283_s14, 4  ;;  %s2524_s21 = sshll.u32 %s2595_s20, 4  ;;  %s3257_s15 = int_to_ptr.vmem [resolvable:$true] %s1974_s15  ;;  %s2525_s21 = int_to_ptr.vmem [resolvable:$false] %s2524_s21 }
  0x2f   : > { %v301_v13 = vsel %vm292_vm2, %v300_v10, 0.0  ;;  %s324_s22 = ssub.f32 %s321_s13, %s321_s13  ;;  %2232 = vmatprep.subr.bf16.mxu1 %v2589_v2  ;;  %s2196_s13 = sshll.u32 %s2657_s28, 9 }
  0x30   : > { %v295_v15 = vadd.f32 %v294_v11, %v293_v9  ;;  %v302_v16 = vrot.slane %v301_v13, 4  ;;  %s3255_s28 = scalar_lea.hbm %s3307_s7, %s2196_s13  ;;  %s2520_s19 = scalar_lea.vmem %s3257_s15, 512 }
  0x31   : > { %v326_v17 = vstv %s324_s22  ;;  %p2521_p9 = scmp.ne.s32.totalorder %s3257_s15, %s2520_s19  ;;  %s2526_s22 = scalar_lea.vmem %s2525_s21, 1024 }
  0x32   : > { %v296_v18 = vrot.slane %v295_v15, 2  ;;  %v303_v19 = vadd.f32 %v302_v16, %v301_v13  ;;  %v327_v20 = vmul.f32 %v326_v17, %v325_v12  ;;  %2235 = vmatpush3.bf16.msk.msra.mxu1 %vm2234_vm5, %v2233_v48  ;;  %v416_v13 = vld [vmem:[%s3302_s2 + $0x2] ss:$0 sm:$0xff]  ;;  %v417_v16 = vld [vmem:[%s3302_s2 + $0x3] ss:$0 sm:$0xff]  ;;  %p2527_p13 = scmp.lt.s32.totalorder %s3257_s15, %s2525_s21  ;;  %p2528_p0 = scmp.lt.s32.totalorder %s2526_s22, %s2520_s19 }
  0x33   : > { %p2522_p11 = pnand %p2521_p9, %p2674_p5 }
  0x34   : > { %v297_v21 = vadd.f32 %v296_v18, %v295_v15  ;;  %v304_v22 = vrot.slane %v303_v19, 2  ;;  %v328_v23 = vadd.f32 %v327_v20, %v323_v14  ;;  %p2529_p1 = por %p2528_p0, %p2527_p13 }
  0x35   : > { %p2523_p12 = pneg %p2522_p11 }
  0x36   : > { %v298_v24 = vrot.slane %v297_v21, 1  ;;  %v305_v25 = vadd.f32 %v304_v22, %v303_v19  ;;  %335 = vperm.xlu0 %2304, %v328_v23   ;;  %v2307_v22 = vld [vmem:[%s3305_s5 + $0x4] ss:$16 sps:$4 sm:$0xff]   ;;  %v2310_v23 = vld [vmem:[%s3305_s5 + $0xc] ss:$16 sps:$4 sm:$0xff]  }
  0x37   : > { %660 = vmatprep.subr.bf16.mxu0 %v2307_v22  ;;  %701 = vmatprep.subr.bf16.mxu1 %v2310_v23  ;;  %v2342_v22 = vld [vmem:[%s3306_s6 + $0x48] ss:$16 sps:$4 sm:$0xff]   ;;  %v2347_v23 = vld [vmem:[%s3306_s6 + $0x64] ss:$16 sps:$4 sm:$0xff]   ;;  %p2530_p2 = pnand %p2529_p1, %p2523_p12 }
  0x38   : > { %v299_v26 = vadd.f32 %v298_v24, %v297_v21  ;;  %v306_v27 = vrot.slane %v305_v25, 1  ;;  %v2305_v24 = vld [vmem:[%s3305_s5] ss:$16 sps:$4 sm:$0xff]  }
  0x3a   : > { %v307_v28 = vadd.f32 %v306_v27, %v305_v25  ;;  %v308_v29 = vmul.f32 0.125, %v299_v26  ;;  %v2308_v25 = vld [vmem:[%s3305_s5 + $0x8] ss:$16 sps:$4 sm:$0xff]   ;;  %v2316_v26 = vld [vmem:[%s3305_s5 + $0x2c] ss:$16 sps:$4 sm:$0xff]  }
  0x3b   : > { %v2311_v27 = vld [vmem:[%s3305_s5 + $0x20] ss:$16 sps:$4 sm:$0xff]  }
  0x3c   : > { %v309_v30 = vmul.f32 0.125, %v307_v28  ;;  %v310_v31 = vmul.f32 %v308_v29, %v308_v29  ;;  %v2314_v28 = vld [vmem:[%s3305_s5 + $0x28] ss:$16 sps:$4 sm:$0xff]  }
  0x3e   : > { %v311_v32 = vsub.f32 %v309_v30, %v310_v31  ;;  %v2322_v30 = vld [vmem:[%s3305_s5 + $0x4c] ss:$16 sps:$4 sm:$0xff]   ;;  %v2317_v31 = vld [vmem:[%s3305_s5 + $0x40] ss:$16 sps:$4 sm:$0xff]  }
  0x40   : > { %v312_v33 = vmax.f32 %v311_v32, 0.0  ;;  %v2320_v32 = vld [vmem:[%s3305_s5 + $0x48] ss:$16 sps:$4 sm:$0xff]  }
  0x42   : > { %v313_v34 = vadd.f32 1e-06, %v312_v33  ;;  %v572_v33 = vld [vmem:[%s3305_s5 + $0x60] sm:$0x11] }
  0x44   : > { %2483 = vrsqrt.f32 %v313_v34  ;;  %v573_v34 = vld [vmem:[%s3305_s5 + $0x68] sm:$0x11] }
  0x4e   : > { %v2484_v36 = vpop.eup %2483 }
  0x4f   : > { %v315_v37 = vmul.f32 %v2484_v36, %v290_v35  ;;  %v2071_v35 = vcombine.high %v572_v33, %v572_v33  ;;  %v2073_v36 = vcombine.high %v573_v34, %v573_v34 }
  0x51   : > { %v316_v39 = vmul.f32 %v315_v37, %v308_v29  ;;  %v318_v40 = vmul.f32 %v315_v37, %v289_v8  ;;  %v2319_v29 = vld [vmem:[%s3305_s5 + $0x44] ss:$16 sps:$4 sm:$0xff]   ;;  %v2070_v37 = vcombine.low %v572_v33, %v572_v33  ;;  %v2360_v33 = vld [vmem:[%s3306_s6 + $0xa8] ss:$16 sps:$4 sm:$0xff]  }
  0x53   : > { %v317_v41 = vsub.f32 %v291_v38, %v316_v39  ;;  %v2072_v38 = vcombine.low %v573_v34, %v573_v34  ;;  %v649_v39 = vsel %vm647_vm7, %v2070_v37, 0  ;;  %v2365_v34 = vld [vmem:[%s3306_s6 + $0xc4] ss:$16 sps:$4 sm:$0xff]   ;;  %v2366_v37 = vld [vmem:[%s3306_s6 + $0xc8] ss:$16 sps:$4 sm:$0xff]  }
  0x55   : > { %v319_v42 = vadd.f32 %v318_v40, %v317_v41  ;;  %v655_v40 = vsel %vm647_vm7, %v2072_v38, 0  ;;  %v2329_v41 = vld [vmem:[%s3306_s6 + $0x4] ss:$16 sps:$4 sm:$0xff]  }
  0x56   : > { %v2371_v38 = vld [vmem:[%s3306_s6 + $0xe4] ss:$16 sps:$4 sm:$0xff]  }
  0x57   : > { %2213 = vmatmul.mubr.msk.f32.vlgmr.msra.gmra.mrb[0].mxu0 %vm292_vm2, %v319_v42  ;;  %v2332_v42 = vld [vmem:[%s3306_s6 + $0xc] ss:$16 sps:$4 sm:$0xff]  }
  0x58   : > { %692 = vmatprep.mubr.bf16.mxu0 %v2592_v6  ;;  %661 = vmatpush1.bf16.msra.mxu0 %v2305_v24  ;;  %v2350_v24 = vld [vmem:[%s3306_s6 + $0x6c] ss:$16 sps:$4 sm:$0xff]  }
  0xb5   : > { %v336_v50 = vpop.permute.xlu0 %335 }
  0xb6   : > { %v338_v51 = vmul.f32 %v336_v50, %v329_v49 }
 0x12a   : > { %v412_v52 = vpop.f32.mrb[0].mxu0 }
 0x12b   : > { %v413_v53 = vadd.f32 %v412_v52, %v338_v51  ;;  %v2214_v54 = vpop.f32.mrb[1].mxu0 }
 0x12d   : > { %v426_v55 = vmul.f32 %v413_v53, %v413_v53  ;;  %v419_v56 = vsel %vm418_vm6, %v413_v53, 0.0 }
 0x12e   : > { %v420_v57 = vrot.slane %v419_v56, 4 }
 0x12f   : > { %v427_v58 = vsel %vm418_vm6, %v426_v55, 0.0 }
 0x130   : > { %v421_v59 = vadd.f32 %v420_v57, %v419_v56  ;;  %v428_v60 = vrot.slane %v427_v58, 4 }
 0x132   : > { %v422_v61 = vrot.slane %v421_v59, 2  ;;  %v429_v62 = vadd.f32 %v428_v60, %v427_v58 }
 0x134   : > { %v423_v63 = vadd.f32 %v422_v61, %v421_v59  ;;  %v430_v0 = vrot.slane %v429_v62, 2 }
 0x136   : > { %v424_v1 = vrot.slane %v423_v63, 1  ;;  %v431_v2 = vadd.f32 %v430_v0, %v429_v62 }
 0x138   : > { %v425_v3 = vadd.f32 %v424_v1, %v423_v63  ;;  %v432_v4 = vrot.slane %v431_v2, 1 }
 0x13a   : > { %v433_v5 = vadd.f32 %v432_v4, %v431_v2  ;;  %v434_v7 = vmul.f32 0.125, %v425_v3  ;;  %v528_v2 = vld [vmem:[%s3302_s2 + $0x4] ss:$0 sm:$0xff] }
 0x13c   : > { %v435_v8 = vmul.f32 0.125, %v433_v5  ;;  %v436_v9 = vmul.f32 %v434_v7, %v434_v7  ;;  %v529_v5 = vld [vmem:[%s3302_s2 + $0x5] ss:$0 sm:$0xff] }
 0x13e   : > { %v437_v10 = vsub.f32 %v435_v8, %v436_v9 }
 0x140   : > { %v438_v11 = vmax.f32 %v437_v10, 0.0 }
 0x142   : > { %v439_v12 = vadd.f32 1e-06, %v438_v11 }
 0x144   : > { %2485 = vrsqrt.f32 %v439_v12  ;;  %v2327_v12 = vld [vmem:[%s3306_s6] ss:$16 sps:$4 sm:$0xff]  }
 0x14e   : > { %v2486_v14 = vpop.eup %2485 }
 0x14f   : > { %v441_v15 = vmul.f32 %v2486_v14, %v416_v13  ;;  %v2330_v13 = vld [vmem:[%s3306_s6 + $0x8] ss:$16 sps:$4 sm:$0xff]  }
 0x151   : > { %v442_v17 = vmul.f32 %v441_v15, %v434_v7  ;;  %v444_v19 = vmul.f32 %v441_v15, %v413_v53  ;;  %v2335_v15 = vld [vmem:[%s3306_s6 + $0x24] ss:$16 sps:$4 sm:$0xff]  }
 0x153   : > { %v443_v18 = vsub.f32 %v417_v16, %v442_v17  ;;  %v2338_v16 = vld [vmem:[%s3306_s6 + $0x2c] ss:$16 sps:$4 sm:$0xff]   ;;  %v2333_v17 = vld [vmem:[%s3306_s6 + $0x20] ss:$16 sps:$4 sm:$0xff]  }
 0x155   : > { %v445_v20 = vadd.f32 %v444_v19, %v443_v18  ;;  %v2336_v18 = vld [vmem:[%s3306_s6 + $0x28] ss:$16 sps:$4 sm:$0xff]   ;;  %v2341_v19 = vld [vmem:[%s3306_s6 + $0x44] ss:$16 sps:$4 sm:$0xff]  }
 0x157   : > { %v446_v21 = vmax.f32 %v445_v20, 0.0  ;;  %v2344_v20 = vld [vmem:[%s3306_s6 + $0x4c] ss:$16 sps:$4 sm:$0xff]  }
 0x159   : > { %2224 = vmatmul.mubr.msk.f32.vlgmr.msra.gmra.mrb[0].mxu1 %vm418_vm6, %v446_v21  ;;  %v2339_v21 = vld [vmem:[%s3306_s6 + $0x40] ss:$16 sps:$4 sm:$0xff]  }
 0x15a   : > { %733 = vmatprep.mubr.bf16.mxu1 %v2592_v6  ;;  %702 = vmatpush1.bf16.msra.mxu1 %v2308_v25  ;;  %v2313_v6 = vld [vmem:[%s3305_s5 + $0x24] ss:$16 sps:$4 sm:$0xff]   ;;  %v2345_v25 = vld [vmem:[%s3306_s6 + $0x60] ss:$16 sps:$4 sm:$0xff]  }
 0x15b   : > { %662 = vmatprep.subr.bf16.mxu0 %v2313_v6  ;;  %703 = vmatprep.subr.bf16.mxu1 %v2316_v26  ;;  %v2348_v6 = vld [vmem:[%s3306_s6 + $0x68] ss:$16 sps:$4 sm:$0xff]   ;;  %v2353_v26 = vld [vmem:[%s3306_s6 + $0x84] ss:$16 sps:$4 sm:$0xff]  }
 0x15c   : > { %663 = vmatpush1.bf16.msra.mxu0 %v2311_v27  ;;  %v2356_v27 = vld [vmem:[%s3306_s6 + $0x8c] ss:$16 sps:$4 sm:$0xff]  }
 0x15d   : > { %664 = vmatprep.subr.bf16.mxu0 %v2319_v29  ;;  %v2354_v29 = vld [vmem:[%s3306_s6 + $0x88] ss:$16 sps:$4 sm:$0xff]  }
 0x15e   : > { %704 = vmatpush1.bf16.msra.mxu1 %v2314_v28  ;;  %v2351_v28 = vld [vmem:[%s3306_s6 + $0x80] ss:$16 sps:$4 sm:$0xff]  }
 0x15f   : > { %705 = vmatprep.subr.bf16.mxu1 %v2322_v30  ;;  %v2359_v30 = vld [vmem:[%s3306_s6 + $0xa4] ss:$16 sps:$4 sm:$0xff]  }
 0x160   : > { %665 = vmatpush1.bf16.msra.mxu0 %v2317_v31  ;;  %v2362_v31 = vld [vmem:[%s3306_s6 + $0xac] ss:$16 sps:$4 sm:$0xff]  }
 0x161   : > { %2074 = vmatprep.subr.msk.bf16.mxu0 %vm647_vm7, %v2071_v35  ;;  %v2368_v35 = vld [vmem:[%s3306_s6 + $0xcc] ss:$16 sps:$4 sm:$0xff]  }
 0x162   : > { %706 = vmatpush1.bf16.msra.mxu1 %v2320_v32  ;;  %v2357_v32 = vld [vmem:[%s3306_s6 + $0xa0] ss:$16 sps:$4 sm:$0xff]  }
 0x163   : > { %2076 = vmatprep.subr.msk.bf16.mxu1 %vm647_vm7, %v2073_v36  ;;  %v2363_v36 = vld [vmem:[%s3306_s6 + $0xc0] ss:$16 sps:$4 sm:$0xff]  }
 0x164   : > { %667 = vmatpush1.bf16.msra.mxu0 %v649_v39  ;;  %v2374_v39 = vld [vmem:[%s3306_s6 + $0xec] ss:$16 sps:$4 sm:$0xff]  }
 0x165   : > { %1600 = vmatprep.subr.bf16.mxu0 %v2329_v41  ;;  %v2372_v41 = vld [vmem:[%s3306_s6 + $0xe8] ss:$16 sps:$4 sm:$0xff]  }
 0x166   : > { %708 = vmatpush1.bf16.msra.mxu1 %v655_v40  ;;  %v2369_v40 = vld [vmem:[%s3306_s6 + $0xe0] ss:$16 sps:$4 sm:$0xff]  }
 0x167   : > { %1682 = vmatprep.subr.bf16.mxu1 %v2332_v42  ;;  %v2377_v42 = vld [vmem:[%s3306_s6 + $0x104] ss:$16 sps:$4 sm:$0xff]  }
 0x22c   : > { %v524_v43 = vpop.f32.mrb[0].mxu1 }
 0x22d   : > { %v531_v44 = vsel %vm530_vm8, %v524_v43, 0.0  ;;  %v538_v45 = vmul.f32 %v524_v43, %v524_v43  ;;  %v2225_v46 = vpop.f32.mrb[1].mxu1 }
 0x22e   : > { %v532_v47 = vrot.slane %v531_v44, 4  ;;  %v2383_v46 = vld [vmem:[%s3306_s6 + $0x124] ss:$16 sps:$4 sm:$0xff]  }
 0x22f   : > { %v539_v48 = vsel %vm530_vm8, %v538_v45, 0.0  ;;  %v2378_v45 = vld [vmem:[%s3306_s6 + $0x108] ss:$16 sps:$4 sm:$0xff]  }
 0x230   : > { %v533_v49 = vadd.f32 %v532_v47, %v531_v44  ;;  %v540_v50 = vrot.slane %v539_v48, 4  ;;  %v2375_v44 = vld [vmem:[%s3306_s6 + $0x100] ss:$16 sps:$4 sm:$0xff]   ;;  %v2386_v47 = vld [vmem:[%s3306_s6 + $0x12c] ss:$16 sps:$4 sm:$0xff]  }
 0x232   : > { %v534_v51 = vrot.slane %v533_v49, 2  ;;  %v541_v52 = vadd.f32 %v540_v50, %v539_v48  ;;  %v2381_v48 = vld [vmem:[%s3306_s6 + $0x120] ss:$16 sps:$4 sm:$0xff]   ;;  %v2389_v50 = vld [vmem:[%s3306_s6 + $0x144] ss:$16 sps:$4 sm:$0xff]  }
 0x234   : > { %v535_v53 = vadd.f32 %v534_v51, %v533_v49  ;;  %v542_v54 = vrot.slane %v541_v52, 2  ;;  %v2384_v49 = vld [vmem:[%s3306_s6 + $0x128] ss:$16 sps:$4 sm:$0xff]   ;;  %v2392_v51 = vld [vmem:[%s3306_s6 + $0x14c] ss:$16 sps:$4 sm:$0xff]  }
 0x236   : > { %v536_v55 = vrot.slane %v535_v53, 1  ;;  %v543_v56 = vadd.f32 %v542_v54, %v541_v52  ;;  %v2387_v52 = vld [vmem:[%s3306_s6 + $0x140] ss:$16 sps:$4 sm:$0xff]   ;;  %v2395_v54 = vld [vmem:[%s3306_s6 + $0x164] ss:$16 sps:$4 sm:$0xff]  }
 0x238   : > { %v537_v57 = vadd.f32 %v536_v55, %v535_v53  ;;  %v544_v58 = vrot.slane %v543_v56, 1  ;;  %v2390_v53 = vld [vmem:[%s3306_s6 + $0x148] ss:$16 sps:$4 sm:$0xff]   ;;  %v2398_v55 = vld [vmem:[%s3306_s6 + $0x16c] ss:$16 sps:$4 sm:$0xff]  }
 0x23a   : > { %v545_v59 = vadd.f32 %v544_v58, %v543_v56  ;;  %v546_v60 = vmul.f32 0.125, %v537_v57  ;;  %v2393_v56 = vld [vmem:[%s3306_s6 + $0x160] ss:$16 sps:$4 sm:$0xff]   ;;  %v2396_v57 = vld [vmem:[%s3306_s6 + $0x168] ss:$16 sps:$4 sm:$0xff]  }
 0x23b   : > { %v2401_v58 = vld [vmem:[%s3306_s6 + $0x184] ss:$16 sps:$4 sm:$0xff]  }
 0x23c   : > { %v547_v61 = vmul.f32 0.125, %v545_v59  ;;  %v548_v62 = vmul.f32 %v546_v60, %v546_v60  ;;  %v2404_v59 = vld [vmem:[%s3306_s6 + $0x18c] ss:$16 sps:$4 sm:$0xff]  }
 0x23e   : > { %v549_v63 = vsub.f32 %v547_v61, %v548_v62  ;;  %v2402_v61 = vld [vmem:[%s3306_s6 + $0x188] ss:$16 sps:$4 sm:$0xff]   ;;  %v2407_v62 = vld [vmem:[%s3306_s6 + $0x1a4] ss:$16 sps:$4 sm:$0xff]  }
 0x240   : > { %v550_v0 = vmax.f32 %v549_v63, 0.0  ;;  %v2410_v63 = vld [vmem:[%s3306_s6 + $0x1ac] ss:$16 sps:$4 sm:$0xff]  }
 0x242   : > { %v551_v1 = vadd.f32 1e-06, %v550_v0  ;;  %v2405_v0 = vld [vmem:[%s3306_s6 + $0x1a0] ss:$16 sps:$4 sm:$0xff]  }
 0x244   : > { %2487 = vrsqrt.f32 %v551_v1  ;;  %v2408_v1 = vld [vmem:[%s3306_s6 + $0x1a8] ss:$16 sps:$4 sm:$0xff]  }
 0x24e   : > { %v2488_v3 = vpop.eup %2487 }
 0x24f   : > { %v553_v4 = vmul.f32 %v2488_v3, %v528_v2  ;;  %v2413_v2 = vld [vmem:[%s3306_s6 + $0x1c4] ss:$16 sps:$4 sm:$0xff]   ;;  %v2416_v3 = vld [vmem:[%s3306_s6 + $0x1cc] ss:$16 sps:$4 sm:$0xff]  }
 0x251   : > { %v554_v7 = vmul.f32 %v553_v4, %v546_v60  ;;  %v556_v9 = vmul.f32 %v553_v4, %v524_v43  ;;  %v2380_v43 = vld [vmem:[%s3306_s6 + $0x10c] ss:$16 sps:$4 sm:$0xff]   ;;  %v2399_v60 = vld [vmem:[%s3306_s6 + $0x180] ss:$16 sps:$4 sm:$0xff]  }
 0x252   : > { %v2411_v4 = vld [vmem:[%s3306_s6 + $0x1c0] ss:$16 sps:$4 sm:$0xff]  }
 0x253   : > { %v555_v8 = vsub.f32 %v529_v5, %v554_v7  ;;  %v2414_v5 = vld [vmem:[%s3306_s6 + $0x1c8] ss:$16 sps:$4 sm:$0xff]   ;;  %v2419_v7 = vld [vmem:[%s3306_s6 + $0x1e4] ss:$16 sps:$4 sm:$0xff]  }
 0x255   : > { %v557_v10 = vadd.f32 %v556_v9, %v555_v8  ;;  %v2422_v8 = vld [vmem:[%s3306_s6 + $0x1ec] ss:$16 sps:$4 sm:$0xff]   ;;  %v2417_v9 = vld [vmem:[%s3306_s6 + $0x1e0] ss:$16 sps:$4 sm:$0xff]  }
 0x257   : > { %v558_v11 = vmax.f32 %v557_v10, 0.0  ;;  %v2420_v10 = vld [vmem:[%s3306_s6 + $0x1e8] ss:$16 sps:$4 sm:$0xff]  }
 0x259   : > { %v559_v14 = vpack.c.bf16 %v558_v11, %v558_v11  ;;  %v2425_v11 = vld [vmem:[%s3306_s6 + $0x204] ss:$16 sps:$4 sm:$0xff]  }
 0x25b   : > { %2075 = vmatmul.mubr.msk.bf16.vlgmr.msra.gmra.mrb[4].mxu0 %vm530_vm8, %v559_v14  ;;  %2077 = vmatmul.mubr.msk.bf16.vlgmr.msra.gmra.mrb[4].mxu1 %vm530_vm8, %v559_v14 }
 0x25c   : > { %1601 = vmatpush1.bf16.msra.mxu0 %v2327_v12  ;;  %1683 = vmatpush1.bf16.msra.mxu1 %v2330_v13  ;;  %v2428_v12 = vld [vmem:[%s3306_s6 + $0x20c] ss:$16 sps:$4 sm:$0xff]  }
 0x25d   : > { %1602 = vmatprep.subr.bf16.mxu0 %v2335_v15  ;;  %1684 = vmatprep.subr.bf16.mxu1 %v2338_v16 }
 0x260   : > { %1603 = vmatpush1.bf16.msra.mxu0 %v2333_v17  ;;  %1685 = vmatpush1.bf16.msra.mxu1 %v2336_v18 }
 0x261   : > { %1604 = vmatprep.subr.bf16.mxu0 %v2341_v19  ;;  %1686 = vmatprep.subr.bf16.mxu1 %v2344_v20 }
 0x264   : > { %1605 = vmatpush1.bf16.msra.mxu0 %v2339_v21  ;;  %1687 = vmatpush1.bf16.msra.mxu1 %v2342_v22 }
 0x265   : > { %1606 = vmatprep.subr.bf16.mxu0 %v2347_v23  ;;  %1688 = vmatprep.subr.bf16.mxu1 %v2350_v24 }
 0x268   : > { %1607 = vmatpush1.bf16.msra.mxu0 %v2345_v25  ;;  %1689 = vmatpush1.bf16.msra.mxu1 %v2348_v6 }
 0x269   : > { %1608 = vmatprep.subr.bf16.mxu0 %v2353_v26  ;;  %1690 = vmatprep.subr.bf16.mxu1 %v2356_v27 }
 0x26c   : > { %1609 = vmatpush1.bf16.msra.mxu0 %v2351_v28  ;;  %1691 = vmatpush1.bf16.msra.mxu1 %v2354_v29 }
 0x26d   : > { %1610 = vmatprep.subr.bf16.mxu0 %v2359_v30  ;;  %1692 = vmatprep.subr.bf16.mxu1 %v2362_v31 }
 0x270   : > { %1611 = vmatpush1.bf16.msra.mxu0 %v2357_v32  ;;  %1693 = vmatpush1.bf16.msra.mxu1 %v2360_v33 }
 0x271   : > { %1612 = vmatprep.subr.bf16.mxu0 %v2365_v34  ;;  %1694 = vmatprep.subr.bf16.mxu1 %v2368_v35 }
 0x274   : > { %1613 = vmatpush1.bf16.msra.mxu0 %v2363_v36  ;;  %1695 = vmatpush1.bf16.msra.mxu1 %v2366_v37 }
 0x275   : > { %1614 = vmatprep.subr.bf16.mxu0 %v2371_v38  ;;  %1696 = vmatprep.subr.bf16.mxu1 %v2374_v39 }
 0x278   : > { %1615 = vmatpush1.bf16.msra.mxu0 %v2369_v40  ;;  %1697 = vmatpush1.bf16.msra.mxu1 %v2372_v41 }
 0x279   : > { %1616 = vmatprep.subr.bf16.mxu0 %v2377_v42  ;;  %1698 = vmatprep.subr.bf16.mxu1 %v2380_v43 }
 0x27c   : > { %1617 = vmatpush1.bf16.msra.mxu0 %v2375_v44  ;;  %1699 = vmatpush1.bf16.msra.mxu1 %v2378_v45 }
 0x27d   : > { %1618 = vmatprep.subr.bf16.mxu0 %v2383_v46  ;;  %1700 = vmatprep.subr.bf16.mxu1 %v2386_v47 }
 0x280   : > { %1619 = vmatpush1.bf16.msra.mxu0 %v2381_v48  ;;  %1701 = vmatpush1.bf16.msra.mxu1 %v2384_v49 }
 0x281   : > { %1620 = vmatprep.subr.bf16.mxu0 %v2389_v50  ;;  %1702 = vmatprep.subr.bf16.mxu1 %v2392_v51 }
 0x284   : > { %1621 = vmatpush1.bf16.msra.mxu0 %v2387_v52  ;;  %1703 = vmatpush1.bf16.msra.mxu1 %v2390_v53 }
 0x285   : > { %1622 = vmatprep.subr.bf16.mxu0 %v2395_v54  ;;  %1704 = vmatprep.subr.bf16.mxu1 %v2398_v55 }
 0x288   : > { %1623 = vmatpush1.bf16.msra.mxu0 %v2393_v56  ;;  %1705 = vmatpush1.bf16.msra.mxu1 %v2396_v57 }
 0x289   : > { %1624 = vmatprep.subr.bf16.mxu0 %v2401_v58  ;;  %1706 = vmatprep.subr.bf16.mxu1 %v2404_v59 }
 0x28c   : > { %1625 = vmatpush1.bf16.msra.mxu0 %v2399_v60  ;;  %1707 = vmatpush1.bf16.msra.mxu1 %v2402_v61 }
 0x28d   : > { %1626 = vmatprep.subr.bf16.mxu0 %v2407_v62  ;;  %1708 = vmatprep.subr.bf16.mxu1 %v2410_v63 }
 0x290   : > { %1627 = vmatpush1.bf16.msra.mxu0 %v2405_v0  ;;  %1709 = vmatpush1.bf16.msra.mxu1 %v2408_v1 }
 0x291   : > { %1628 = vmatprep.subr.bf16.mxu0 %v2413_v2  ;;  %1710 = vmatprep.subr.bf16.mxu1 %v2416_v3 }
 0x294   : > { %1629 = vmatpush1.bf16.msra.mxu0 %v2411_v4  ;;  %1711 = vmatpush1.bf16.msra.mxu1 %v2414_v5 }
 0x295   : > { %1630 = vmatprep.subr.bf16.mxu0 %v2419_v7  ;;  %1712 = vmatprep.subr.bf16.mxu1 %v2422_v8 }
 0x298   : > { %1631 = vmatpush1.bf16.msra.mxu0 %v2417_v9  ;;  %1713 = vmatpush1.bf16.msra.mxu1 %v2420_v10 }
 0x299   : > { %1641 = vmatprep.subr.bf16.mxu0 %v2425_v11  ;;  %1723 = vmatprep.subr.bf16.mxu1 %v2428_v12 }
 0x32e   : > { %v3012_v13 = vpop.f32.mrb[4].mxu0  ;;  %v3014_v14 = vpop.f32.mrb[4].mxu1 }
 0x32f   : > { %v746_v15 = vrot.slane %v3012_v13, 4  ;;  %v772_v16 = vmul.f32 %v3012_v13, %v3012_v13  ;;  %v758_v17 = vrot.slane %v3014_v14, 4  ;;  %v774_v18 = vmul.f32 %v3014_v14, %v3014_v14  ;;  %v3022_v19 = vpop.f32.mrb[5].mxu0  ;;  %v3024_v20 = vpop.f32.mrb[5].mxu1 }
 0x330   : > { %v752_v21 = vrot.slane %v3022_v19, 4  ;;  %v773_v22 = vmul.f32 %v3022_v19, %v3022_v19  ;;  %v765_v23 = vsel %vm764_vm9, %v3024_v20, 0.0  ;;  %v775_v24 = vmul.f32 %v3024_v20, %v3024_v20  ;;  %v698_v25 = vpop.f32.mrb[6].mxu0  ;;  %v739_v6 = vpop.f32.mrb[6].mxu1 }
 0x331   : > { %v747_v26 = vadd.f32 %v746_v15, %v3012_v13  ;;  %v776_v27 = vrot.slane %v772_v16, 4  ;;  %v759_v28 = vadd.f32 %v758_v17, %v3014_v14  ;;  %v788_v29 = vrot.slane %v774_v18, 4  ;;  %v699_v30 = vpop.f32.mrb[7].mxu0  ;;  %v740_v31 = vpop.f32.mrb[7].mxu1 }
 0x332   : > { %v753_v32 = vadd.f32 %v752_v21, %v3022_v19  ;;  %v782_v33 = vrot.slane %v773_v22, 4  ;;  %v766_v34 = vrot.slane %v765_v23, 4  ;;  %v794_v35 = vsel %vm764_vm9, %v775_v24, 0.0 }
 0x333   : > { %v748_v36 = vrot.slane %v747_v26, 2  ;;  %v777_v37 = vadd.f32 %v776_v27, %v772_v16  ;;  %v760_v38 = vrot.slane %v759_v28, 2  ;;  %v789_v39 = vadd.f32 %v788_v29, %v774_v18 }
 0x334   : > { %v754_v40 = vrot.slane %v753_v32, 2  ;;  %v783_v41 = vadd.f32 %v782_v33, %v773_v22  ;;  %v767_v42 = vadd.f32 %v766_v34, %v765_v23  ;;  %v795_v43 = vrot.slane %v794_v35, 4 }
 0x335   : > { %v749_v44 = vadd.f32 %v748_v36, %v747_v26  ;;  %v778_v45 = vrot.slane %v777_v37, 2  ;;  %v761_v46 = vadd.f32 %v760_v38, %v759_v28  ;;  %v790_v47 = vrot.slane %v789_v39, 2 }
 0x336   : > { %v755_v48 = vadd.f32 %v754_v40, %v753_v32  ;;  %v784_v49 = vrot.slane %v783_v41, 2  ;;  %v768_v50 = vrot.slane %v767_v42, 2  ;;  %v796_v51 = vadd.f32 %v795_v43, %v794_v35 }
 0x337   : > { %v750_v52 = vrot.slane %v749_v44, 1  ;;  %v779_v53 = vadd.f32 %v778_v45, %v777_v37  ;;  %v762_v54 = vrot.slane %v761_v46, 1  ;;  %v791_v55 = vadd.f32 %v790_v47, %v789_v39 }
 0x338   : > { %v756_v56 = vrot.slane %v755_v48, 1  ;;  %v785_v57 = vadd.f32 %v784_v49, %v783_v41  ;;  %v769_v58 = vadd.f32 %v768_v50, %v767_v42  ;;  %v797_v59 = vrot.slane %v796_v51, 2  ;;  %v2078_v41 = vld [vmem:[%s3302_s2 + $0x6] ss:$8 sm:$0xf] }
 0x339   : > { %v751_v60 = vadd.f32 %v750_v52, %v749_v44  ;;  %v780_v61 = vrot.slane %v779_v53, 1  ;;  %v763_v62 = vadd.f32 %v762_v54, %v761_v46  ;;  %v792_v63 = vrot.slane %v791_v55, 1 }
 0x33a   : > { %v757_v0 = vadd.f32 %v756_v56, %v755_v48  ;;  %v786_v1 = vrot.slane %v785_v57, 1  ;;  %v770_v2 = vrot.slane %v769_v58, 1  ;;  %v798_v3 = vadd.f32 %v797_v59, %v796_v51 }
 0x33b   : > { %v781_v4 = vadd.f32 %v780_v61, %v779_v53  ;;  %v801_v5 = vmul.f32 0.125, %v751_v60  ;;  %v793_v7 = vadd.f32 %v792_v63, %v791_v55  ;;  %v803_v8 = vmul.f32 0.125, %v763_v62 }
 0x33c   : > { %v787_v9 = vadd.f32 %v786_v1, %v785_v57  ;;  %v802_v10 = vmul.f32 0.125, %v757_v0  ;;  %v771_v11 = vadd.f32 %v770_v2, %v769_v58  ;;  %v799_v12 = vrot.slane %v798_v3, 1 }
 0x33d   : > { %v805_v15 = vmul.f32 0.125, %v781_v4  ;;  %v809_v16 = vmul.f32 %v801_v5, %v801_v5  ;;  %v807_v17 = vmul.f32 0.125, %v793_v7  ;;  %v811_v18 = vmul.f32 %v803_v8, %v803_v8 }
 0x33e   : > { %v806_v21 = vmul.f32 0.125, %v787_v9  ;;  %v810_v22 = vmul.f32 %v802_v10, %v802_v10  ;;  %v800_v23 = vadd.f32 %v799_v12, %v798_v3  ;;  %v804_v24 = vmul.f32 0.125, %v771_v11 }
 0x33f   : > { %v813_v25 = vsub.f32 %v805_v15, %v809_v16  ;;  %v815_v6 = vsub.f32 %v807_v17, %v811_v18  ;;  %v830_v26 = vlaneseq  ;;  %v2594_v46 = vmov 1966171168  }
 0x340   : > { %v814_v27 = vsub.f32 %v806_v21, %v810_v22  ;;  %v808_v28 = vmul.f32 0.125, %v800_v23  ;;  %v812_v29 = vmul.f32 %v804_v24, %v804_v24  ;;  %v865_v47 = vunpack.c.l.s4 %v2594_v46  ;;  %v2446_v46 = vld [vmem:[%s3306_s6 + $0x26c] ss:$16 sps:$4 sm:$0xff]  }
 0x341   : > { %v817_v30 = vmax.f32 %v813_v25, 0.0  ;;  %v819_v31 = vmax.f32 %v815_v6, 0.0  ;;  %v831_v36 = vshrl.u32 %v830_v26, 7 }
 0x342   : > { %v818_v32 = vmax.f32 %v814_v27, 0.0  ;;  %v816_v33 = vsub.f32 %v808_v28, %v812_v29  ;;  %v866_v54 = vunpack.c.0.s8 %v865_v47  ;;  %v2441_v47 = vld [vmem:[%s3306_s6 + $0x260] ss:$16 sps:$4 sm:$0xff]  }
 0x343   : > { %v821_v34 = vadd.f32 1e-06, %v817_v30  ;;  %v823_v35 = vadd.f32 1e-06, %v819_v31  ;;  %v3037_v40 = vsub.s32 0, %v831_v36  ;;  %v3042_v42 = vsub.s32 2, %v831_v36 }
 0x344   : > { %v822_v37 = vadd.f32 1e-06, %v818_v32  ;;  %v820_v38 = vmax.f32 %v816_v33, 0.0  ;;  %v3044_v43 = vsub.s32 1, %v831_v36  ;;  %v3046_v44 = vsub.s32 3, %v831_v36 }
 0x345   : > { %2489 = vrsqrt.f32 %v821_v34  ;;  %v833_v45 = vrot.slane %v2078_v41, %v3037_v40  ;;  %v841_v48 = vrot.slane %v2078_v41, %v3042_v42  ;;  %v3052_v62 = vsub.s32 %v866_v54, %v831_v36  ;;  %v2431_v32 = vld [vmem:[%s3306_s6 + $0x224] ss:$16 sps:$4 sm:$0xff]   ;;  %v2434_v33 = vld [vmem:[%s3306_s6 + $0x22c] ss:$16 sps:$4 sm:$0xff]   ;;  %v2432_v36 = vld [vmem:[%s3306_s6 + $0x228] ss:$16 sps:$4 sm:$0xff]  }
 0x346   : > { %2491 = vrsqrt.f32 %v823_v35  ;;  %v824_v39 = vadd.f32 1e-06, %v820_v38  ;;  %v837_v49 = vrot.slane %v2078_v41, %v3044_v43  ;;  %v845_v51 = vrot.slane %v2078_v41, %v3046_v44  ;;  %v2429_v35 = vld [vmem:[%s3306_s6 + $0x220] ss:$16 sps:$4 sm:$0xff]   ;;  %v2440_v38 = vld [vmem:[%s3306_s6 + $0x24c] ss:$16 sps:$4 sm:$0xff]  }
 0x347   : > { %2493 = vrsqrt.f32 %v822_v37  ;;  %v2437_v37 = vld [vmem:[%s3306_s6 + $0x244] ss:$16 sps:$4 sm:$0xff]   ;;  %v2438_v41 = vld [vmem:[%s3306_s6 + $0x248] ss:$16 sps:$4 sm:$0xff]   ;;  %v2458_v54 = vld [vmem:[%s3306_s6 + $0x2ac] ss:$16 sps:$4 sm:$0xff]  }
 0x348   : > { %2495 = vrsqrt.f32 %v824_v39  ;;  %v2435_v39 = vld [vmem:[%s3306_s6 + $0x240] ss:$16 sps:$4 sm:$0xff]  }
 0x34f   : > { %v2490_v50 = vpop.eup %2489 }
 0x350   : > { %v2492_v52 = vpop.eup %2491  ;;  %v850_v53 = vmul.f32 %v2490_v50, %v833_v45  ;;  %v2443_v45 = vld [vmem:[%s3306_s6 + $0x264] ss:$16 sps:$4 sm:$0xff]   ;;  %v2452_v50 = vld [vmem:[%s3306_s6 + $0x28c] ss:$16 sps:$4 sm:$0xff]  }
 0x351   : > { %v2494_v55 = vpop.eup %2493  ;;  %v852_v56 = vmul.f32 %v2492_v52, %v841_v48  ;;  %v2444_v48 = vld [vmem:[%s3306_s6 + $0x268] ss:$16 sps:$4 sm:$0xff]  }
 0x352   : > { %v2496_v57 = vpop.eup %2495  ;;  %v854_v58 = vmul.f32 %v850_v53, %v801_v5  ;;  %v851_v59 = vmul.f32 %v2494_v55, %v837_v49  ;;  %v891_v9 = vrot.slane %v850_v53, %v3037_v40  ;;  %v2449_v49 = vld [vmem:[%s3306_s6 + $0x284] ss:$16 sps:$4 sm:$0xff]   ;;  %v2450_v52 = vld [vmem:[%s3306_s6 + $0x288] ss:$16 sps:$4 sm:$0xff]   ;;  %v2453_v55 = vld [vmem:[%s3306_s6 + $0x2a0] ss:$16 sps:$4 sm:$0xff]  }
 0x353   : > { %v853_v60 = vmul.f32 %v2496_v57, %v845_v51  ;;  %v856_v63 = vmul.f32 %v852_v56, %v803_v8  ;;  %v899_v11 = vrot.slane %v852_v56, %v3037_v40  ;;  %v2447_v51 = vld [vmem:[%s3306_s6 + $0x280] ss:$16 sps:$4 sm:$0xff]   ;;  %v2455_v53 = vld [vmem:[%s3306_s6 + $0x2a4] ss:$16 sps:$4 sm:$0xff]   ;;  %v2456_v56 = vld [vmem:[%s3306_s6 + $0x2a8] ss:$16 sps:$4 sm:$0xff]  }
 0x354   : > { %v855_v61 = vmul.f32 %v851_v59, %v802_v10  ;;  %v895_v5 = vrot.slane %v851_v59, %v3037_v40  ;;  %v2079_v10 = vld [vmem:[%s3302_s2 + $0x7] ss:$8 sm:$0xf]  ;;  %v904_v16 = vmul.f32 %v891_v9, %v3012_v13  ;;  %v2459_v59 = vld [vmem:[%s3306_s6 + $0x2c0] ss:$16 sps:$4 sm:$0xff]  }
 0x355   : > { %v857_v0 = vmul.f32 %v853_v60, %v804_v24  ;;  %v903_v8 = vrot.slane %v853_v60, %v3037_v40  ;;  %v906_v17 = vmul.f32 %v899_v11, %v3014_v14  ;;  %v2461_v57 = vld [vmem:[%s3306_s6 + $0x2c4] ss:$16 sps:$4 sm:$0xff]   ;;  %v2462_v60 = vld [vmem:[%s3306_s6 + $0x2c8] ss:$16 sps:$4 sm:$0xff]  }
 0x356   : > { %v862_v1 = vcombine.low %v854_v58, %v855_v61  ;;  %v905_v18 = vmul.f32 %v895_v5, %v3022_v19  ;;  %v2423_v19 = vld [vmem:[%s3306_s6 + $0x200] ss:$16 sps:$4 sm:$0xff]   ;;  %v2464_v58 = vld [vmem:[%s3306_s6 + $0x2cc] ss:$16 sps:$4 sm:$0xff]   ;;  %v2467_v61 = vld [vmem:[%s3306_s6 + $0x2e4] ss:$16 sps:$4 sm:$0xff]  }
 0x357   : > { %v863_v2 = vcombine.low %v856_v63, %v857_v0  ;;  %v907_v21 = vmul.f32 %v903_v8, %v3024_v20  ;;  %v2426_v20 = vld [vmem:[%s3306_s6 + $0x208] ss:$16 sps:$4 sm:$0xff]   ;;  %v2470_v63 = vld [vmem:[%s3306_s6 + $0x2ec] ss:$16 sps:$4 sm:$0xff]   ;;  %v2465_v0 = vld [vmem:[%s3306_s6 + $0x2e0] ss:$16 sps:$4 sm:$0xff]  }
 0x358   : > { %v870_v3 = vrot.slane %v862_v1, %v3052_v62  ;;  %v2468_v1 = vld [vmem:[%s3306_s6 + $0x2e8] ss:$16 sps:$4 sm:$0xff]   ;;  %v2477_v9 = vld [vmem:[%s3306_s6 + $0x324] ss:$16 sps:$4 sm:$0x1f]  }
 0x359   : > { %v877_v4 = vrot.slane %v863_v2, %v3052_v62  ;;  %v2473_v2 = vld [vmem:[%s3306_s6 + $0x304] ss:$16 sps:$4 sm:$0xff]   ;;  %v2479_v11 = vld [vmem:[%s3306_s6 + $0x32c] ss:$16 sps:$4 sm:$0x1f]  }
 0x35a   : > { %v2481_v5 = vld [vmem:[%s3306_s6 + $0x320] ss:$16 sps:$4 sm:$0x1f]  }
 0x35b   : > { %v878_v7 = vcombine.low %v870_v3, %v877_v4  ;;  %v2476_v3 = vld [vmem:[%s3306_s6 + $0x30c] ss:$16 sps:$4 sm:$0xff]   ;;  %v2471_v4 = vld [vmem:[%s3306_s6 + $0x300] ss:$16 sps:$4 sm:$0xff]   ;;  %v1589_v8 = vsel %vm1587_vm10, %v2481_v5, 0 }
 0x35d   : > { %v885_v12 = vrot.slane %v878_v7, %v3052_v62  ;;  %v2474_v7 = vld [vmem:[%s3306_s6 + $0x308] ss:$16 sps:$4 sm:$0xff]  }
 0x35f   : > { %v887_v15 = vsub.f32 %v2079_v10, %v885_v12  ;;  %v2482_v10 = vld [vmem:[%s3306_s6 + $0x328] ss:$16 sps:$4 sm:$0x1f]  }
 0x360   : > { %v1595_v12 = vsel %vm1587_vm10, %v2482_v10, 0 }
 0x361   : > { %v924_v22 = vrot.slane %v887_v15, %v3046_v44  ;;  %v916_v23 = vrot.slane %v887_v15, %v3044_v43  ;;  %v912_v24 = vrot.slane %v887_v15, %v3037_v40  ;;  %v920_v25 = vrot.slane %v887_v15, %v3042_v42 }
 0x363   : > { %v932_v6 = vadd.f32 %v924_v22, %v907_v21  ;;  %v930_v26 = vadd.f32 %v916_v23, %v905_v18  ;;  %v929_v27 = vadd.f32 %v912_v24, %v904_v16  ;;  %v3072_v28 = vadd.f32 %v920_v25, %v906_v17  ;;  %v2080_v17 = vld [vmem:[%s3302_s2 + $0x22] ss:$8 sm:$0xf] }
 0x364   : > { %v1051_v18 = vrot.slane %v2080_v17, %v3037_v40  ;;  %v1059_v21 = vrot.slane %v2080_v17, %v3042_v42  ;;  %v1055_v22 = vrot.slane %v2080_v17, %v3044_v43  ;;  %v1063_v23 = vrot.slane %v2080_v17, %v3046_v44 }
 0x365   : > { %v934_v13 = vmax.f32 %v930_v26, 0.0  ;;  %v933_v29 = vmax.f32 %v929_v27, 0.0  ;;  %v936_v14 = vmax.f32 %v932_v6, 0.0  ;;  %v935_v15 = vmax.f32 %v3072_v28, 0.0 }
 0x367   : > { %v938_v30 = vpack.c.bf16 %v934_v13, %v934_v13  ;;  %v937_v31 = vpack.c.bf16 %v933_v29, %v933_v29  ;;  %v940_v34 = vpack.c.bf16 %v936_v14, %v936_v14  ;;  %v939_v16 = vpack.c.bf16 %v935_v15, %v935_v15 }
 0x369   : > { %1632 = vmatprep.mubr.bf16.mxu0 %v938_v30  ;;  %1714 = vmatprep.mubr.bf16.mxu1 %v938_v30 }
 0x36a   : > { %1633 = vmatmul.mubr.bf16.vlgmr.msra.gmra.mrb[8].mxu0 %v937_v31  ;;  %1715 = vmatmul.mubr.bf16.vlgmr.msra.gmra.mrb[8].mxu1 %v937_v31 }
 0x36b   : > { %1642 = vmatpush1.bf16.msra.mxu0 %v2423_v19  ;;  %1724 = vmatpush1.bf16.msra.mxu1 %v2426_v20 }
 0x36c   : > { %2186 = vmatprep.mubr.msk.bf16.mxu0 %vm764_vm9, %v940_v34  ;;  %2188 = vmatprep.mubr.msk.bf16.mxu1 %vm764_vm9, %v940_v34 }
 0x36d   : > { %1643 = vmatprep.subr.bf16.mxu0 %v2431_v32  ;;  %1725 = vmatprep.subr.bf16.mxu1 %v2434_v33 }
 0x36f   : > { %1644 = vmatpush1.bf16.msra.mxu0 %v2429_v35  ;;  %1726 = vmatpush1.bf16.msra.mxu1 %v2432_v36 }
 0x370   : > { %1645 = vmatprep.subr.bf16.mxu0 %v2437_v37  ;;  %1727 = vmatprep.subr.bf16.mxu1 %v2440_v38 }
 0x373   : > { %1646 = vmatpush1.bf16.msra.mxu0 %v2435_v39  ;;  %1728 = vmatpush1.bf16.msra.mxu1 %v2438_v41 }
 0x374   : > { %1647 = vmatprep.subr.bf16.mxu0 %v2443_v45  ;;  %1729 = vmatprep.subr.bf16.mxu1 %v2446_v46 }
 0x377   : > { %1648 = vmatpush1.bf16.msra.mxu0 %v2441_v47  ;;  %1730 = vmatpush1.bf16.msra.mxu1 %v2444_v48 }
 0x378   : > { %1649 = vmatprep.subr.bf16.mxu0 %v2449_v49  ;;  %1731 = vmatprep.subr.bf16.mxu1 %v2452_v50 }
 0x37b   : > { %1650 = vmatpush1.bf16.msra.mxu0 %v2447_v51  ;;  %1732 = vmatpush1.bf16.msra.mxu1 %v2450_v52 }
 0x37c   : > { %1651 = vmatprep.subr.bf16.mxu0 %v2455_v53  ;;  %1733 = vmatprep.subr.bf16.mxu1 %v2458_v54 }
 0x37f   : > { %1652 = vmatpush1.bf16.msra.mxu0 %v2453_v55  ;;  %1734 = vmatpush1.bf16.msra.mxu1 %v2456_v56 }
 0x380   : > { %1653 = vmatprep.subr.bf16.mxu0 %v2461_v57  ;;  %1735 = vmatprep.subr.bf16.mxu1 %v2464_v58 }
 0x383   : > { %1654 = vmatpush1.bf16.msra.mxu0 %v2459_v59  ;;  %1736 = vmatpush1.bf16.msra.mxu1 %v2462_v60 }
 0x384   : > { %1655 = vmatprep.subr.bf16.mxu0 %v2467_v61  ;;  %1737 = vmatprep.subr.bf16.mxu1 %v2470_v63 }
 0x387   : > { %1656 = vmatpush1.bf16.msra.mxu0 %v2465_v0  ;;  %1738 = vmatpush1.bf16.msra.mxu1 %v2468_v1 }
 0x388   : > { %1657 = vmatprep.subr.bf16.mxu0 %v2473_v2  ;;  %1739 = vmatprep.subr.bf16.mxu1 %v2476_v3 }
 0x38b   : > { %1658 = vmatpush1.bf16.msra.mxu0 %v2471_v4  ;;  %1740 = vmatpush1.bf16.msra.mxu1 %v2474_v7 }
 0x38c   : > { %2185 = vmatprep.subr.msk.bf16.mxu0 %vm1587_vm10, %v2477_v9  ;;  %2187 = vmatprep.subr.msk.bf16.mxu1 %vm1587_vm10, %v2479_v11 }
 0x38f   : > { %1660 = vmatpush1.bf16.msra.mxu0 %v1589_v8  ;;  %1742 = vmatpush1.bf16.msra.mxu1 %v1595_v12 }
 0x392   : > { %1674 = vmatmul.mubr.bf16.vlgmr.msra.gmra.mrb[8].mxu0 %v939_v16  ;;  %1756 = vmatmul.mubr.bf16.vlgmr.msra.gmra.mrb[8].mxu1 %v939_v16 }
 0x465   : > { %v1675_v24 = vpop.f32.mrb[8].mxu0  ;;  %v1757_v25 = vpop.f32.mrb[8].mxu1 }
 0x466   : > { %v3198_v6 = vadd.f32 %v1675_v24, %v1051_v18  ;;  %v3200_v26 = vadd.f32 %v1757_v25, %v1059_v21  ;;  %v1677_v27 = vpop.f32.mrb[9].mxu0  ;;  %v1759_v28 = vpop.f32.mrb[9].mxu1 }
 0x467   : > { %v3202_v13 = vadd.f32 %v1677_v27, %v1055_v22  ;;  %v3204_v29 = vadd.f32 %v1759_v28, %v1063_v23  ;;  %v1679_v14 = vpop.f32.mrb[10].mxu0  ;;  %v1761_v30 = vpop.f32.mrb[10].mxu1 }
 0x468   : > { %v1768_v19 = vrot.slane %v3198_v6, 4  ;;  %v1794_v20 = vmul.f32 %v3198_v6, %v3198_v6  ;;  %v1780_v31 = vrot.slane %v3200_v26, 4  ;;  %v1796_v32 = vmul.f32 %v3200_v26, %v3200_v26  ;;  %v1680_v33 = vpop.f32.mrb[11].mxu0  ;;  %v1762_v34 = vpop.f32.mrb[11].mxu1 }
 0x469   : > { %v1774_v35 = vrot.slane %v3202_v13, 4  ;;  %v1795_v36 = vmul.f32 %v3202_v13, %v3202_v13  ;;  %v1787_v37 = vsel %vm1786_vm11, %v3204_v29, 0.0  ;;  %v1797_v38 = vmul.f32 %v3204_v29, %v3204_v29 }
 0x46a   : > { %v1769_v39 = vadd.f32 %v3198_v6, %v1768_v19  ;;  %v1798_v41 = vrot.slane %v1794_v20, 4  ;;  %v1781_v45 = vadd.f32 %v3200_v26, %v1780_v31  ;;  %v1810_v46 = vrot.slane %v1796_v32, 4 }
 0x46b   : > { %v1775_v47 = vadd.f32 %v3202_v13, %v1774_v35  ;;  %v1804_v48 = vrot.slane %v1795_v36, 4  ;;  %v1788_v49 = vrot.slane %v1787_v37, 4  ;;  %v1816_v50 = vsel %vm1786_vm11, %v1797_v38, 0.0 }
 0x46c   : > { %v1770_v51 = vrot.slane %v1769_v39, 2  ;;  %v1799_v52 = vadd.f32 %v1798_v41, %v1794_v20  ;;  %v1782_v53 = vrot.slane %v1781_v45, 2  ;;  %v1811_v54 = vadd.f32 %v1810_v46, %v1796_v32 }
 0x46d   : > { %v1776_v55 = vrot.slane %v1775_v47, 2  ;;  %v1805_v56 = vadd.f32 %v1804_v48, %v1795_v36  ;;  %v1789_v57 = vadd.f32 %v1788_v49, %v1787_v37  ;;  %v1817_v58 = vrot.slane %v1816_v50, 4 }
 0x46e   : > { %v1771_v59 = vadd.f32 %v1770_v51, %v1769_v39  ;;  %v1800_v60 = vrot.slane %v1799_v52, 2  ;;  %v1783_v61 = vadd.f32 %v1782_v53, %v1781_v45  ;;  %v1812_v63 = vrot.slane %v1811_v54, 2 }
 0x46f   : > { %v1777_v0 = vadd.f32 %v1776_v55, %v1775_v47  ;;  %v1806_v1 = vrot.slane %v1805_v56, 2  ;;  %v1790_v2 = vrot.slane %v1789_v57, 2  ;;  %v1818_v3 = vadd.f32 %v1817_v58, %v1816_v50  ;;  %v2189_v58 = vld [vmem:[%s3302_s2 + $0x20] ss:$8 sm:$0xf] }
 0x470   : > { %v1772_v4 = vrot.slane %v1771_v59, 1  ;;  %v1801_v7 = vadd.f32 %v1800_v60, %v1799_v52  ;;  %v1784_v9 = vrot.slane %v1783_v61, 1  ;;  %v1813_v11 = vadd.f32 %v1812_v63, %v1811_v54 }
 0x471   : > { %v1778_v5 = vrot.slane %v1777_v0, 1  ;;  %v1807_v10 = vadd.f32 %v1806_v1, %v1805_v56  ;;  %v1791_v8 = vadd.f32 %v1790_v2, %v1789_v57  ;;  %v1819_v12 = vrot.slane %v1818_v3, 2 }
 0x472   : > { %v1773_v15 = vadd.f32 %v1772_v4, %v1771_v59  ;;  %v1802_v16 = vrot.slane %v1801_v7, 1  ;;  %v1785_v17 = vadd.f32 %v1784_v9, %v1783_v61  ;;  %v1814_v18 = vrot.slane %v1813_v11, 1 }
 0x473   : > { %v1779_v21 = vadd.f32 %v1778_v5, %v1777_v0  ;;  %v1808_v22 = vrot.slane %v1807_v10, 1  ;;  %v1792_v23 = vrot.slane %v1791_v8, 1  ;;  %v1820_v24 = vadd.f32 %v1819_v12, %v1818_v3 }
 0x474   : > { %v1803_v25 = vadd.f32 %v1802_v16, %v1801_v7  ;;  %v1823_v27 = vmul.f32 0.125, %v1773_v15  ;;  %v1815_v28 = vadd.f32 %v1814_v18, %v1813_v11  ;;  %v1825_v14 = vmul.f32 0.125, %v1785_v17 }
 0x475   : > { %v1809_v30 = vadd.f32 %v1808_v22, %v1807_v10  ;;  %v1824_v19 = vmul.f32 0.125, %v1779_v21  ;;  %v1793_v20 = vadd.f32 %v1792_v23, %v1791_v8  ;;  %v1821_v31 = vrot.slane %v1820_v24, 1 }
 0x476   : > { %v1827_v32 = vmul.f32 0.125, %v1803_v25  ;;  %v1831_v33 = vmul.f32 %v1823_v27, %v1823_v27  ;;  %v1829_v34 = vmul.f32 0.125, %v1815_v28  ;;  %v1833_v35 = vmul.f32 %v1825_v14, %v1825_v14  ;;  %v2190_v25 = vld [vmem:[%s3302_s2 + $0x21] ss:$8 sm:$0xf] }
 0x477   : > { %v1828_v36 = vmul.f32 0.125, %v1809_v30  ;;  %v1832_v37 = vmul.f32 %v1824_v19, %v1824_v19  ;;  %v1822_v38 = vadd.f32 %v1821_v31, %v1820_v24  ;;  %v1826_v39 = vmul.f32 0.125, %v1793_v20 }
 0x478   : > { %v1835_v41 = vsub.f32 %v1827_v32, %v1831_v33  ;;  %v1837_v45 = vsub.f32 %v1829_v34, %v1833_v35  ;;  %v1855_v59 = vrot.slane %v2189_v58, %v3037_v40  ;;  %v1863_v60 = vrot.slane %v2189_v58, %v3042_v42 }
 0x479   : > { %v1836_v46 = vsub.f32 %v1828_v36, %v1832_v37  ;;  %v1830_v47 = vmul.f32 0.125, %v1822_v38  ;;  %v1834_v48 = vmul.f32 %v1826_v39, %v1826_v39  ;;  %v1859_v61 = vrot.slane %v2189_v58, %v3044_v43 }
 0x47a   : > { %v1839_v49 = vmax.f32 %v1835_v41, 0.0  ;;  %v1841_v50 = vmax.f32 %v1837_v45, 0.0  ;;  %v1867_v0 = vrot.slane %v2189_v58, %v3046_v44 }
 0x47b   : > { %v1840_v51 = vmax.f32 %v1836_v46, 0.0  ;;  %v1838_v52 = vsub.f32 %v1830_v47, %v1834_v48 }
 0x47c   : > { %v1843_v53 = vadd.f32 1e-06, %v1839_v49  ;;  %v1845_v54 = vadd.f32 1e-06, %v1841_v50 }
 0x47d   : > { %v1844_v55 = vadd.f32 1e-06, %v1840_v51  ;;  %v1842_v56 = vmax.f32 %v1838_v52, 0.0 }
 0x47e   : > { %2497 = vrsqrt.f32 %v1843_v53 }
 0x47f   : > { %2499 = vrsqrt.f32 %v1845_v54  ;;  %v1846_v57 = vadd.f32 1e-06, %v1842_v56 }
 0x480   : > { %2501 = vrsqrt.f32 %v1844_v55 }
 0x481   : > { %2503 = vrsqrt.f32 %v1846_v57 }
 0x488   : > { %v2498_v63 = vpop.eup %2497 }
 0x489   : > { %v2500_v1 = vpop.eup %2499  ;;  %v1872_v2 = vmul.f32 %v2498_v63, %v1855_v59 }
 0x48a   : > { %v2502_v3 = vpop.eup %2501  ;;  %v1874_v4 = vmul.f32 %v2500_v1, %v1863_v60 }
 0x48b   : > { %v2504_v7 = vpop.eup %2503  ;;  %v1876_v9 = vmul.f32 %v1872_v2, %v1823_v27  ;;  %v1873_v11 = vmul.f32 %v2502_v3, %v1859_v61  ;;  %v1913_v22 = vrot.slane %v1872_v2, %v3037_v40 }
 0x48c   : > { %v1875_v5 = vmul.f32 %v2504_v7, %v1867_v0  ;;  %v1878_v8 = vmul.f32 %v1874_v4, %v1825_v14  ;;  %v1921_v23 = vrot.slane %v1874_v4, %v3037_v40 }
 0x48d   : > { %v1877_v10 = vmul.f32 %v1873_v11, %v1824_v19  ;;  %v1917_v24 = vrot.slane %v1873_v11, %v3037_v40  ;;  %v1926_v30 = vmul.f32 %v3198_v6, %v1913_v22 }
 0x48e   : > { %v1879_v12 = vmul.f32 %v1875_v5, %v1826_v39  ;;  %v1925_v27 = vrot.slane %v1875_v5, %v3037_v40  ;;  %v1928_v19 = vmul.f32 %v3200_v26, %v1921_v23 }
 0x48f   : > { %v1884_v15 = vcombine.low %v1876_v9, %v1877_v10  ;;  %v1927_v20 = vmul.f32 %v3202_v13, %v1917_v24 }
 0x490   : > { %v1885_v16 = vcombine.low %v1878_v8, %v1879_v12  ;;  %v1929_v31 = vmul.f32 %v3204_v29, %v1925_v27 }
 0x491   : > { %v1892_v17 = vrot.slane %v1884_v15, %v3052_v62 }
 0x492   : > { %v1899_v18 = vrot.slane %v1885_v16, %v3052_v62 }
 0x494   : > { %v1900_v21 = vcombine.low %v1892_v17, %v1899_v18 }
 0x496   : > { %v1907_v28 = vrot.slane %v1900_v21, %v3052_v62 }
 0x498   : > { %v1909_v14 = vsub.f32 %v2190_v25, %v1907_v28 }
 0x49a   : > { %v1946_v32 = vrot.slane %v1909_v14, %v3046_v44  ;;  %v1934_v33 = vrot.slane %v1909_v14, %v3037_v40  ;;  %v1938_v62 = vrot.slane %v1909_v14, %v3044_v43  ;;  %v1942_v34 = vrot.slane %v1909_v14, %v3042_v42 }
 0x49c   : > { %v1954_v6 = vadd.f32 %v1946_v32, %v1929_v31  ;;  %v1951_v35 = vadd.f32 %v1934_v33, %v1926_v30  ;;  %v1952_v26 = vadd.f32 %v1938_v62, %v1927_v20  ;;  %v1953_v36 = vadd.f32 %v1942_v34, %v1928_v19 }
 0x49e   : > { %1958 = vst.msk [vmem:[%s283_s14 + $0x18] sm:$0xff] %vm1786_vm11, %v1954_v6  ;;  %1955 = vst [vmem:[%s283_s14] sm:$0xff] %v1951_v35 }
 0x49f   : > { %1956 = vst [vmem:[%s283_s14 + $0x8] sm:$0xff] %v1952_v26  ;;  %1957 = vst [vmem:[%s283_s14 + $0x10] sm:$0xff] %v1953_v36 }
 0x4a0   : > { %2533 = shalt.err (!%p2530_p2)
}
 0x4a1   : > { %s2534_s23 = scalar_lea.hbm %s3255_s28, 512  ;;  %s2538_s9 = scalar_lea.hbm %s3307_s7, 2048 }
 0x4a2   : > { %p2535_p3 = scmp.ne.s32.totalorder %s3255_s28, %s2534_s23  ;;  %p2539_p8 = scmp.lt.u32.totalorder %s3255_s28, %s3307_s7 }
 0x4a3   : > { %p2540_p10 = scmp.lt.u32.totalorder %s2538_s9, %s2534_s23  ;;  %p2542_p11 = scmp.lt.u32.totalorder %s2534_s23, %s3255_s28 }
 0x4a4   : > { %p2536_p4 = pnand %p2535_p3, %p2674_p5 }
 0x4a5   : > { %p2541_p9 = por %p2540_p10, %p2539_p8 }
 0x4a6   : > { %p2537_p7 = pneg %p2536_p4 }
 0x4a7   : > { %p2543_p12 = por %p2542_p11, %p2541_p9 }
 0x4a9   : > { %p2544_p13 = pnand %p2543_p12, %p2537_p7 }
 0x4ab   : > { %2547 = shalt.err (!%p2544_p13)
}
 0x4ac   : > { %2252 = dma.vmem_to_hbm [thread:$0]  (%p2674_p5), %s3257_s15, 512, %s3255_s28, %s1960_s18  }
 0x4ad PF: > { %p2264_p0 = scmp.ge.s32.totalorder %s2586_s27, 2  ;;  %s1986_s16 = sand.u32 1, %s2574_s24  }
 0x4ae   : > { %s1987_s17 = scalar_lea.sflag [#allocation3], %s1986_s16 }
 0x4af   : > { %p2259_p1 = pnand %p2264_p0, %p2678_p6 }
 0x4b1   : > { %2569 = dma.done.wait (!%p2259_p1), %s1987_s17, 512  }
 0x4b2   : > { %2571 = vsyncadd (!%p2259_p1), %s1987_s17, 4294966784  ;;  %p18_p2 = scmp.ge.s32.totalorder %s2661_s30, 6   ;;  %s3311_s24 = smov %s2578_s25 }
 0x4b3   : > { %s3312_s25 = smov %s2582_s26  ;;  %s3313_s26 = smov %s2672_s10 }
 0x4b4   : > { %s3314_s27 = smov %s2661_s30  ;;  %20 = sbr.rel (!%p18_p2) target bundleno = 4 (0x4), region = 93 }
 0x4bb   :  { %1992 = vsyncpa [#allocation3], 1 }
 0x4bc   :  { %1994 = vsyncpa [#allocation3 + $0x1], 1 }
 0x4bd   :  { %1995 = vsyncpa [#allocation4], 1 }
 0x4be   :  { %1997 = vsyncpa [#allocation4 + $0x1], 1 }

</bundles_post_ra>
